<compile_context>
chip_gen: v7x
topology: tpu7x:2x2x1
jax: 0.10.0
libtpu: 0.0.40
codegen_flags: <defaults>
</compile_context>

<pallas_src>
import functools

import numpy as np
import jax
import jax.numpy as jnp
from jax import lax
from jax.experimental import pallas as pl
from jax.experimental.pallas import tpu as pltpu

_EPS = 1e-5


def _basic_block_kernel(x_ref, w1_ref, w2_ref, cred_ref, cbrd_ref,
                        g1_ref, b1_ref, g2_ref, b2_ref, out_ref,
                        *, N, H, W, C):
    # x_ref:    (N*H, W*C)       unpadded input, lane-dense rows, f32
    # w1_ref:   (W*C, 3*W*C)     banded conv1 weight, dy bands stacked, bf16
    # w2_ref:   (W*C, 3*W*C)     banded conv2 weight, bf16
    # cred_ref: (W*C, C)         per-channel lane-reduction matrix, f32
    # cbrd_ref: (C, W*C)         per-channel lane-broadcast matrix (= cred.T)
    # g*/b*:    (1, C)           BN gamma / beta, f32
    # out_ref:  (N*H, W*C)       lane-dense output, f32
    NH = N * H
    WC = W * C
    inv_p = 1.0 / float(N * H * W)                 # compile-time 1/P

    x = x_ref[...]                                 # (NH, WC) f32, reused for shortcut

    # per-image vertical boundary masks (hoisted; used by both convs)
    row = lax.broadcasted_iota(jnp.int32, (NH, WC), 0) % H
    not_top = row != 0                             # row y-1 exists in this image
    not_bot = row != (H - 1)                       # row y+1 exists in this image

    def band_conv(act, w_ref):
        # one bf16 MXU dot per conv; vertical taps recombined with XLU rolls
        yall = jnp.dot(act.astype(jnp.bfloat16), w_ref[...],
                       preferred_element_type=jnp.float32)       # (NH, 3*WC)
        c0 = yall[:, :WC]              # contribution of input row y-1
        c1 = yall[:, WC:2 * WC]        # contribution of input row y
        c2 = yall[:, 2 * WC:]          # contribution of input row y+1
        y = c1
        y = y + jnp.where(not_top, pltpu.roll(c0, 1, 0), 0.0)      # shift down 1
        y = y + jnp.where(not_bot, pltpu.roll(c2, NH - 1, 0), 0.0)  # shift up 1
        return y

    def batchnorm(y, g_ref, b_ref):
        # single-pass f32 stats; per-channel reduce/broadcast via 2 tiny dots
        s = jnp.sum(y, axis=0, keepdims=True)                       # (1, WC)
        ss = jnp.sum(y * y, axis=0, keepdims=True)                  # (1, WC)
        mom = jnp.dot(jnp.concatenate([s, ss], axis=0), cred_ref[...],
                      preferred_element_type=jnp.float32) * inv_p   # (2, C)
        mean = mom[0:1]
        var = jnp.maximum(mom[1:2] - mean * mean, 0.0)              # clamp cancellation
        scale = g_ref[...] * lax.rsqrt(var + _EPS)                  # (1, C)
        shift = b_ref[...] - mean * scale                           # (1, C)
        st = jnp.dot(jnp.concatenate([scale, shift], axis=0), cbrd_ref[...],
                     preferred_element_type=jnp.float32)            # (2, WC)
        return y * st[0:1] + st[1:2]

    # conv1 -> bn1 -> relu
    h1 = jnp.maximum(batchnorm(band_conv(x, w1_ref), g1_ref, b1_ref), 0.0)
    # conv2 -> bn2 (h1 consumed straight from vregs, no VMEM round-trip)
    h2 = batchnorm(band_conv(h1, w2_ref), g2_ref, b2_ref)
    # identity shortcut + relu (f32)
    out_ref[...] = jnp.maximum(h2 + x, 0.0)


def _make_band_weight_stacked(w, W):
    """Fold an HWIO (3,3,Cin,Cout) conv weight into (W*Cin, 3*W*Cout).

    The three vertical taps (dy) are stacked side-by-side along the output
    columns; the horizontal 'same' zero-padding is folded in as zero bands.
    For input row r:  (x[r] @ band)[:, dy*W*Cout:(dy+1)*W*Cout] is the
    contribution of row r to output row r - (dy - 1)."""
    kh, kw, cin, cout = w.shape
    # shift[dx, xi, xo] = 1  iff  xi == xo + dx - 1   (valid taps only)
    shift = np.stack([np.eye(W, k=1 - dx, dtype=np.float32) for dx in range(kw)])
    band = jnp.einsum('ydio,dpq->piyqo',
                      w.astype(jnp.float32), jnp.asarray(shift))
    return band.reshape(W * cin, kh * W * cout)


def basic_block_forward_nhwc(x_nhwc, params):
    """x_nhwc: (N, H, W, C) float32 -> (N, H, W, C) float32 (no transposes)."""
    w1, g1, b1, w2, g2, b2 = params
    N, H, W, C = x_nhwc.shape
    assert w1.shape[2] == w1.shape[3] == C, "identity-shortcut configuration"
    WC = W * C
    NH = N * H

    # bf16 weights for the MXU; BN params / reduce matrices stay f32
    w1b = _make_band_weight_stacked(w1, W).astype(jnp.bfloat16)      # (WC, 3*WC)
    w2b = _make_band_weight_stacked(w2, W).astype(jnp.bfloat16)
    cred = jnp.asarray(np.tile(np.eye(C, dtype=np.float32), (W, 1)))  # (WC, C)
    cbrd = cred.T                                                     # (C, WC)

    x2 = x_nhwc.astype(jnp.float32).reshape(NH, WC)                   # free reshape

    kernel = functools.partial(_basic_block_kernel, N=N, H=H, W=W, C=C)

    out2d = pl.pallas_call(
        kernel,
        out_shape=jax.ShapeDtypeStruct((NH, WC), jnp.float32),
        in_specs=[pl.BlockSpec(memory_space=pltpu.MemorySpace.VMEM)] * 9,
        out_specs=pl.BlockSpec(memory_space=pltpu.MemorySpace.VMEM),
        compiler_params=pltpu.CompilerParams(vmem_limit_bytes=32 * 1024 * 1024),
    )(x2, w1b, w2b, cred, cbrd,
      g1.reshape(1, C).astype(jnp.float32), b1.reshape(1, C).astype(jnp.float32),
      g2.reshape(1, C).astype(jnp.float32), b2.reshape(1, C).astype(jnp.float32))

    return out2d.reshape(N, H, W, C)


def basic_block_forward(x_nchw, params):
    """PyTorch-style NCHW entry point.  For a stack of blocks prefer
    basic_block_forward_nhwc to avoid per-block layout transposes."""
    x_nhwc = jnp.transpose(x_nchw, (0, 2, 3, 1))
    out = basic_block_forward_nhwc(x_nhwc, params)
    return jnp.transpose(out, (0, 3, 1, 2))


def init_params(key, in_planes, planes):
    """Deterministic init mirroring PyTorch shapes (HWIO conv weights)."""
    k1, k2 = jax.random.split(key)
    bound1 = 1.0 / (in_planes * 9) ** 0.5
    bound2 = 1.0 / (planes * 9) ** 0.5
    w1 = jax.random.uniform(k1, (3, 3, in_planes, planes), jnp.float32,
                            -bound1, bound1)
    w2 = jax.random.uniform(k2, (3, 3, planes, planes), jnp.float32,
                            -bound2, bound2)
    g1 = jnp.ones((planes,), jnp.float32)
    b1 = jnp.zeros((planes,), jnp.float32)
    g2 = jnp.ones((planes,), jnp.float32)
    b2 = jnp.zeros((planes,), jnp.float32)
    return w1, g1, b1, w2, g2, b2


def _reference(x_nchw, params, conv_dtype=jnp.float32):
    """Pure-JAX reference (nn.Conv2d / BatchNorm2d-train semantics).

    conv_dtype=bfloat16 mirrors the kernel's intentional bf16 conv operands
    (f32 accumulation); everything else stays f32."""
    w1, g1, b1, w2, g2, b2 = params

    def conv(x, w):
        return lax.conv_general_dilated(
            x.astype(conv_dtype), w.astype(conv_dtype),
            window_strides=(1, 1), padding=((1, 1), (1, 1)),
            dimension_numbers=("NCHW", "HWIO", "NCHW"),
            preferred_element_type=jnp.float32)

    def bn(y, g, b):
        m = jnp.mean(y, axis=(0, 2, 3), keepdims=True)
        v = jnp.mean((y - m) ** 2, axis=(0, 2, 3), keepdims=True)
        return ((y - m) * lax.rsqrt(v + _EPS) * g.reshape(1, -1, 1, 1)
                + b.reshape(1, -1, 1, 1))

    out = jax.nn.relu(bn(conv(x_nchw, w1), g1, b1))
    out = bn(conv(out, w2), g2, b2) + x_nchw
    return jax.nn.relu(out)


if __name__ == "__main__":
    key = jax.random.PRNGKey(0)
    kx, kp = jax.random.split(key)

    # layer1-style block of ResNet2D: in_planes == planes == 16, stride = 1.
    N, C, H, W = 2, 16, 16, 16
    x = jax.random.normal(kx, (N, C, H, W), jnp.float32)
    params = init_params(kp, C, C)

    out = jax.block_until_ready(basic_block_forward(x, params))
    assert out.shape == (N, C, H, W)

    # Tight check against a reference with matching bf16 conv-operand precision
    # (isolates kernel bugs from the intentional bf16 rounding).
    ref_bf16 = jax.block_until_ready(_reference(x, params, conv_dtype=jnp.bfloat16))
    err_bf16 = float(jnp.max(jnp.abs(out - ref_bf16)))
    assert jnp.allclose(out, ref_bf16, atol=2e-3, rtol=2e-3), err_bf16

    # Looser sanity check against the full-f32 reference; the gap is the
    # intentional bf16 conv-operand rounding (MXU throughput optimization).
    ref_f32 = jax.block_until_ready(_reference(x, params, conv_dtype=jnp.float32))
    err_f32 = float(jnp.max(jnp.abs(out - ref_f32)))
    assert jnp.allclose(out, ref_f32, atol=3e-2, rtol=3e-2), err_f32

    print("KERNEL_OK")
</pallas_src>

<mosaic_0001>
module attributes {stable_mosaic.version = 11 : i64} {
  func.func @_basic_block_kernel(%arg0: memref<32x256xf32, #tpu.memory_space<vmem>>, %arg1: memref<256x768xbf16, #tpu.memory_space<vmem>>, %arg2: memref<256x768xbf16, #tpu.memory_space<vmem>>, %arg3: memref<256x16xf32, #tpu.memory_space<vmem>>, %arg4: memref<16x256xf32, #tpu.memory_space<vmem>>, %arg5: memref<1x16xf32, #tpu.memory_space<vmem>>, %arg6: memref<1x16xf32, #tpu.memory_space<vmem>>, %arg7: memref<1x16xf32, #tpu.memory_space<vmem>>, %arg8: memref<1x16xf32, #tpu.memory_space<vmem>>, %arg9: memref<32x256xf32, #tpu.memory_space<vmem>>) attributes {dimension_semantics = [], scalar_prefetch = 0 : i64, scratch_operands = 0 : i64, tpu.core_type = #tpu.core_type<tc>} {
    %c0 = arith.constant 0 : index
    %c0_0 = arith.constant 0 : index
    %0 = vector.load %arg0[%c0, %c0_0] : memref<32x256xf32, #tpu.memory_space<vmem>>, vector<32x256xf32>
    %1 = tpu.iota {dimensions = array<i32: 0>} : vector<32x256xi32>
    %c16_i32 = arith.constant 16 : i32
    %c0_i32 = arith.constant 0 : i32
    %2 = arith.cmpi eq, %c16_i32, %c0_i32 : i32
    %c1_i32 = arith.constant 1 : i32
    %3 = arith.select %2, %c1_i32, %c16_i32 : i32
    %4 = vector.broadcast %3 : i32 to vector<32x256xi32>
    %5 = arith.remsi %1, %4 : vector<32x256xi32>
    %c0_i32_1 = arith.constant 0 : i32
    %6 = vector.broadcast %c0_i32_1 : i32 to vector<32x256xi32>
    %7 = arith.cmpi ne, %5, %6 : vector<32x256xi32>
    %c0_i32_2 = arith.constant 0 : i32
    %8 = vector.broadcast %c0_i32_2 : i32 to vector<32x256xi32>
    %9 = arith.cmpi slt, %5, %8 : vector<32x256xi32>
    %c0_i32_3 = arith.constant 0 : i32
    %10 = arith.cmpi slt, %3, %c0_i32_3 : i32
    %11 = vector.broadcast %10 : i1 to vector<32x256xi1>
    %12 = vector.broadcast %11 : vector<32x256xi1> to vector<32x256xi1>
    %13 = arith.xori %9, %12 : vector<32x256xi1>
    %14 = arith.andi %13, %7 : vector<32x256xi1>
    %15 = vector.broadcast %3 : i32 to vector<32x256xi32>
    %16 = arith.addi %5, %15 : vector<32x256xi32>
    %17 = arith.select %14, %16, %5 : vector<32x256xi1>, vector<32x256xi32>
    %c0_i32_4 = arith.constant 0 : i32
    %18 = vector.broadcast %c0_i32_4 : i32 to vector<32x256xi32>
    %19 = arith.cmpi ne, %17, %18 : vector<32x256xi32>
    %c15_i32 = arith.constant 15 : i32
    %20 = vector.broadcast %c15_i32 : i32 to vector<32x256xi32>
    %21 = arith.cmpi ne, %17, %20 : vector<32x256xi32>
    %22 = arith.truncf %0 : vector<32x256xf32> to vector<32x256xbf16>
    %c0_5 = arith.constant 0 : index
    %c0_6 = arith.constant 0 : index
    %23 = vector.load %arg1[%c0_5, %c0_6] : memref<256x768xbf16, #tpu.memory_space<vmem>>, vector<256x768xbf16>
    %cst = arith.constant dense<0.000000e+00> : vector<32x768xf32>
    %24 = tpu.matmul %22, %23, %cst {dimension_numbers = #tpu.dot_dimension_numbers<[1], [0], [0], [1], [0, 0, 1, 1], [], []>} : vector<32x256xbf16>, vector<256x768xbf16>, vector<32x768xf32> -> vector<32x768xf32>
    %25 = vector.extract_strided_slice %24 {offsets = [0, 0], sizes = [32, 256], strides = [1, 1]} : vector<32x768xf32> to vector<32x256xf32>
    %26 = vector.extract_strided_slice %24 {offsets = [0, 256], sizes = [32, 256], strides = [1, 1]} : vector<32x768xf32> to vector<32x256xf32>
    %27 = vector.extract_strided_slice %24 {offsets = [0, 512], sizes = [32, 256], strides = [1, 1]} : vector<32x768xf32> to vector<32x256xf32>
    %c1_i32_7 = arith.constant 1 : i32
    %28 = tpu.dynamic_rotate %25 by %c1_i32_7 dim 0 : vector<32x256xf32>, i32 -> vector<32x256xf32>
    %cst_8 = arith.constant 0.000000e+00 : f32
    %29 = vector.broadcast %cst_8 : f32 to vector<32x256xf32>
    %30 = arith.select %19, %28, %29 : vector<32x256xi1>, vector<32x256xf32>
    %31 = arith.addf %26, %30 : vector<32x256xf32>
    %c31_i32 = arith.constant 31 : i32
    %32 = tpu.dynamic_rotate %27 by %c31_i32 dim 0 : vector<32x256xf32>, i32 -> vector<32x256xf32>
    %cst_9 = arith.constant 0.000000e+00 : f32
    %33 = vector.broadcast %cst_9 : f32 to vector<32x256xf32>
    %34 = arith.select %21, %32, %33 : vector<32x256xi1>, vector<32x256xf32>
    %35 = arith.addf %31, %34 : vector<32x256xf32>
    %cst_10 = arith.constant dense<0.000000e+00> : vector<256xf32>
    %36 = vector.multi_reduction <add>, %35, %cst_10 [0] : vector<32x256xf32> to vector<256xf32>
    %37 = vector.shape_cast %36 : vector<256xf32> to vector<1x256xf32>
    %38 = arith.mulf %35, %35 : vector<32x256xf32>
    %cst_11 = arith.constant dense<0.000000e+00> : vector<256xf32>
    %39 = vector.multi_reduction <add>, %38, %cst_11 [0] : vector<32x256xf32> to vector<256xf32>
    %40 = vector.shape_cast %39 : vector<256xf32> to vector<1x256xf32>
    %41 = tpu.concatenate %37, %40 in 0 : vector<1x256xf32>, vector<1x256xf32> -> vector<2x256xf32>
    %c0_12 = arith.constant 0 : index
    %c0_13 = arith.constant 0 : index
    %42 = vector.load %arg3[%c0_12, %c0_13] : memref<256x16xf32, #tpu.memory_space<vmem>>, vector<256x16xf32>
    %cst_14 = arith.constant dense<0.000000e+00> : vector<2x16xf32>
    %43 = tpu.matmul %41, %42, %cst_14 {dimension_numbers = #tpu.dot_dimension_numbers<[1], [0], [0], [1], [0, 0, 1, 1], [], []>} : vector<2x256xf32>, vector<256x16xf32>, vector<2x16xf32> -> vector<2x16xf32>
    %cst_15 = arith.constant 0.001953125 : f32
    %44 = vector.broadcast %cst_15 : f32 to vector<2x16xf32>
    %45 = arith.mulf %43, %44 : vector<2x16xf32>
    %46 = vector.extract_strided_slice %45 {offsets = [0, 0], sizes = [1, 16], strides = [1, 1]} : vector<2x16xf32> to vector<1x16xf32>
    %47 = vector.extract_strided_slice %45 {offsets = [1, 0], sizes = [1, 16], strides = [1, 1]} : vector<2x16xf32> to vector<1x16xf32>
    %48 = arith.mulf %46, %46 : vector<1x16xf32>
    %49 = arith.subf %47, %48 : vector<1x16xf32>
    %cst_16 = arith.constant 0.000000e+00 : f32
    %50 = vector.broadcast %cst_16 : f32 to vector<1x16xf32>
    %51 = arith.maximumf %49, %50 : vector<1x16xf32>
    %c0_17 = arith.constant 0 : index
    %c0_18 = arith.constant 0 : index
    %52 = vector.load %arg5[%c0_17, %c0_18] : memref<1x16xf32, #tpu.memory_space<vmem>>, vector<1x16xf32>
    %cst_19 = arith.constant 9.99999974E-6 : f32
    %53 = vector.broadcast %cst_19 : f32 to vector<1x16xf32>
    %54 = arith.addf %51, %53 : vector<1x16xf32>
    %55 = math.rsqrt %54 : vector<1x16xf32>
    %56 = arith.mulf %52, %55 : vector<1x16xf32>
    %c0_20 = arith.constant 0 : index
    %c0_21 = arith.constant 0 : index
    %57 = vector.load %arg6[%c0_20, %c0_21] : memref<1x16xf32, #tpu.memory_space<vmem>>, vector<1x16xf32>
    %58 = arith.mulf %46, %56 : vector<1x16xf32>
    %59 = arith.subf %57, %58 : vector<1x16xf32>
    %60 = tpu.concatenate %56, %59 in 0 : vector<1x16xf32>, vector<1x16xf32> -> vector<2x16xf32>
    %c0_22 = arith.constant 0 : index
    %c0_23 = arith.constant 0 : index
    %61 = vector.load %arg4[%c0_22, %c0_23] : memref<16x256xf32, #tpu.memory_space<vmem>>, vector<16x256xf32>
    %cst_24 = arith.constant dense<0.000000e+00> : vector<2x256xf32>
    %62 = tpu.matmul %60, %61, %cst_24 {dimension_numbers = #tpu.dot_dimension_numbers<[1], [0], [0], [1], [0, 0, 1, 1], [], []>} : vector<2x16xf32>, vector<16x256xf32>, vector<2x256xf32> -> vector<2x256xf32>
    %63 = vector.extract_strided_slice %62 {offsets = [0, 0], sizes = [1, 256], strides = [1, 1]} : vector<2x256xf32> to vector<1x256xf32>
    %64 = vector.broadcast %63 : vector<1x256xf32> to vector<32x256xf32>
    %65 = arith.mulf %35, %64 : vector<32x256xf32>
    %66 = vector.extract_strided_slice %62 {offsets = [1, 0], sizes = [1, 256], strides = [1, 1]} : vector<2x256xf32> to vector<1x256xf32>
    %67 = vector.broadcast %66 : vector<1x256xf32> to vector<32x256xf32>
    %68 = arith.addf %65, %67 : vector<32x256xf32>
    %cst_25 = arith.constant 0.000000e+00 : f32
    %69 = vector.broadcast %cst_25 : f32 to vector<32x256xf32>
    %70 = arith.maximumf %68, %69 : vector<32x256xf32>
    %71 = arith.truncf %70 : vector<32x256xf32> to vector<32x256xbf16>
    %c0_26 = arith.constant 0 : index
    %c0_27 = arith.constant 0 : index
    %72 = vector.load %arg2[%c0_26, %c0_27] : memref<256x768xbf16, #tpu.memory_space<vmem>>, vector<256x768xbf16>
    %cst_28 = arith.constant dense<0.000000e+00> : vector<32x768xf32>
    %73 = tpu.matmul %71, %72, %cst_28 {dimension_numbers = #tpu.dot_dimension_numbers<[1], [0], [0], [1], [0, 0, 1, 1], [], []>} : vector<32x256xbf16>, vector<256x768xbf16>, vector<32x768xf32> -> vector<32x768xf32>
    %74 = vector.extract_strided_slice %73 {offsets = [0, 0], sizes = [32, 256], strides = [1, 1]} : vector<32x768xf32> to vector<32x256xf32>
    %75 = vector.extract_strided_slice %73 {offsets = [0, 256], sizes = [32, 256], strides = [1, 1]} : vector<32x768xf32> to vector<32x256xf32>
    %76 = vector.extract_strided_slice %73 {offsets = [0, 512], sizes = [32, 256], strides = [1, 1]} : vector<32x768xf32> to vector<32x256xf32>
    %c1_i32_29 = arith.constant 1 : i32
    %77 = tpu.dynamic_rotate %74 by %c1_i32_29 dim 0 : vector<32x256xf32>, i32 -> vector<32x256xf32>
    %cst_30 = arith.constant 0.000000e+00 : f32
    %78 = vector.broadcast %cst_30 : f32 to vector<32x256xf32>
    %79 = arith.select %19, %77, %78 : vector<32x256xi1>, vector<32x256xf32>
    %80 = arith.addf %75, %79 : vector<32x256xf32>
    %c31_i32_31 = arith.constant 31 : i32
    %81 = tpu.dynamic_rotate %76 by %c31_i32_31 dim 0 : vector<32x256xf32>, i32 -> vector<32x256xf32>
    %cst_32 = arith.constant 0.000000e+00 : f32
    %82 = vector.broadcast %cst_32 : f32 to vector<32x256xf32>
    %83 = arith.select %21, %81, %82 : vector<32x256xi1>, vector<32x256xf32>
    %84 = arith.addf %80, %83 : vector<32x256xf32>
    %cst_33 = arith.constant dense<0.000000e+00> : vector<256xf32>
    %85 = vector.multi_reduction <add>, %84, %cst_33 [0] : vector<32x256xf32> to vector<256xf32>
    %86 = vector.shape_cast %85 : vector<256xf32> to vector<1x256xf32>
    %87 = arith.mulf %84, %84 : vector<32x256xf32>
    %cst_34 = arith.constant dense<0.000000e+00> : vector<256xf32>
    %88 = vector.multi_reduction <add>, %87, %cst_34 [0] : vector<32x256xf32> to vector<256xf32>
    %89 = vector.shape_cast %88 : vector<256xf32> to vector<1x256xf32>
    %90 = tpu.concatenate %86, %89 in 0 : vector<1x256xf32>, vector<1x256xf32> -> vector<2x256xf32>
    %c0_35 = arith.constant 0 : index
    %c0_36 = arith.constant 0 : index
    %91 = vector.load %arg3[%c0_35, %c0_36] : memref<256x16xf32, #tpu.memory_space<vmem>>, vector<256x16xf32>
    %cst_37 = arith.constant dense<0.000000e+00> : vector<2x16xf32>
    %92 = tpu.matmul %90, %91, %cst_37 {dimension_numbers = #tpu.dot_dimension_numbers<[1], [0], [0], [1], [0, 0, 1, 1], [], []>} : vector<2x256xf32>, vector<256x16xf32>, vector<2x16xf32> -> vector<2x16xf32>
    %cst_38 = arith.constant 0.001953125 : f32
    %93 = vector.broadcast %cst_38 : f32 to vector<2x16xf32>
    %94 = arith.mulf %92, %93 : vector<2x16xf32>
    %95 = vector.extract_strided_slice %94 {offsets = [0, 0], sizes = [1, 16], strides = [1, 1]} : vector<2x16xf32> to vector<1x16xf32>
    %96 = vector.extract_strided_slice %94 {offsets = [1, 0], sizes = [1, 16], strides = [1, 1]} : vector<2x16xf32> to vector<1x16xf32>
    %97 = arith.mulf %95, %95 : vector<1x16xf32>
    %98 = arith.subf %96, %97 : vector<1x16xf32>
    %cst_39 = arith.constant 0.000000e+00 : f32
    %99 = vector.broadcast %cst_39 : f32 to vector<1x16xf32>
    %100 = arith.maximumf %98, %99 : vector<1x16xf32>
    %c0_40 = arith.constant 0 : index
    %c0_41 = arith.constant 0 : index
    %101 = vector.load %arg7[%c0_40, %c0_41] : memref<1x16xf32, #tpu.memory_space<vmem>>, vector<1x16xf32>
    %cst_42 = arith.constant 9.99999974E-6 : f32
    %102 = vector.broadcast %cst_42 : f32 to vector<1x16xf32>
    %103 = arith.addf %100, %102 : vector<1x16xf32>
    %104 = math.rsqrt %103 : vector<1x16xf32>
    %105 = arith.mulf %101, %104 : vector<1x16xf32>
    %c0_43 = arith.constant 0 : index
    %c0_44 = arith.constant 0 : index
    %106 = vector.load %arg8[%c0_43, %c0_44] : memref<1x16xf32, #tpu.memory_space<vmem>>, vector<1x16xf32>
    %107 = arith.mulf %95, %105 : vector<1x16xf32>
    %108 = arith.subf %106, %107 : vector<1x16xf32>
    %109 = tpu.concatenate %105, %108 in 0 : vector<1x16xf32>, vector<1x16xf32> -> vector<2x16xf32>
    %c0_45 = arith.constant 0 : index
    %c0_46 = arith.constant 0 : index
    %110 = vector.load %arg4[%c0_45, %c0_46] : memref<16x256xf32, #tpu.memory_space<vmem>>, vector<16x256xf32>
    %cst_47 = arith.constant dense<0.000000e+00> : vector<2x256xf32>
    %111 = tpu.matmul %109, %110, %cst_47 {dimension_numbers = #tpu.dot_dimension_numbers<[1], [0], [0], [1], [0, 0, 1, 1], [], []>} : vector<2x16xf32>, vector<16x256xf32>, vector<2x256xf32> -> vector<2x256xf32>
    %112 = vector.extract_strided_slice %111 {offsets = [0, 0], sizes = [1, 256], strides = [1, 1]} : vector<2x256xf32> to vector<1x256xf32>
    %113 = vector.broadcast %112 : vector<1x256xf32> to vector<32x256xf32>
    %114 = arith.mulf %84, %113 : vector<32x256xf32>
    %115 = vector.extract_strided_slice %111 {offsets = [1, 0], sizes = [1, 256], strides = [1, 1]} : vector<2x256xf32> to vector<1x256xf32>
    %116 = vector.broadcast %115 : vector<1x256xf32> to vector<32x256xf32>
    %117 = arith.addf %114, %116 : vector<32x256xf32>
    %118 = arith.addf %117, %0 : vector<32x256xf32>
    %cst_48 = arith.constant 0.000000e+00 : f32
    %119 = vector.broadcast %cst_48 : f32 to vector<32x256xf32>
    %120 = arith.maximumf %118, %119 : vector<32x256xf32>
    %c0_49 = arith.constant 0 : index
    %c0_50 = arith.constant 0 : index
    %121 = vector.load %arg9[%c0_49, %c0_50] : memref<32x256xf32, #tpu.memory_space<vmem>>, vector<32x256xf32>
    tpu.vector_store %arg9[%c0_49, %c0_50], %120 {strides = array<i32>} : memref<32x256xf32, #tpu.memory_space<vmem>>, vector<32x256xf32>,
    return
  }
}

</mosaic_0001>

<bundles_post_ra>
// kernel: tpu_custom_call.1
= control target key start
LH: loop header
LB: loop body
LE: loop exit
PB: predicated region body
PF: predicated region fallthrough
CT: control target
= control target key end

     0   :  { %14 = vsyncpa [#allocation3], 0  ;;  %s3683_s0 = inlined_call_operand.vmem [shape: f32[32,256], index: 0, kind: input, shape index: {}]   ;;  %s3684_s1 = inlined_call_operand.hbm [shape: bf16[256,768], index: 1, kind: input, shape index: {}]   ;;  %s3685_s2 = inlined_call_operand.hbm [shape: bf16[256,768], index: 2, kind: input, shape index: {}]   ;;  %s3686_s3 = inlined_call_operand.vmem [shape: f32[256,16], index: 3, kind: input, shape index: {}]   ;;  %s3687_s4 = inlined_call_operand.vmem [shape: f32[16,256], index: 4, kind: input, shape index: {}]   ;;  %s3688_s5 = inlined_call_operand.vmem [shape: f32[1,16], index: 5, kind: input, shape index: {}]   ;;  %s3689_s6 = inlined_call_operand.vmem [shape: f32[1,16], index: 6, kind: input, shape index: {}]   ;;  %s3690_s7 = inlined_call_operand.vmem [shape: f32[1,16], index: 7, kind: input, shape index: {}]   ;;  %s3691_s8 = inlined_call_operand.vmem [shape: f32[1,16], index: 8, kind: input, shape index: {}]   ;;  %s3692_s9 = inlined_call_operand.hbm [shape: f32[32,256], index: 9, kind: output, shape index: {}]  }
   0x1   :  { %15 = vsyncpa [#allocation6], 0 }
   0x2   :  { %16 = vsyncpa [#allocation4], 0  ;;  %s3063_s30 = smov [#allocation2]   ;;  %s2991_s13 = scalar_lea.hbm %s3684_s1, 12288 }
   0x3   :  { %s24_s10 = sshll.u32 %s3063_s30, 4  ;;  %p2992_p0 = scmp.ne.s32.totalorder %s3684_s1, %s2991_s13  ;;  %s25_s10 = int_to_ptr.vmem [resolvable:$true] %s24_s10 }
   0x4   :  { %p2995_p1 = scmp.lt.u32.totalorder %s2991_s13, %s3684_s1 }
   0x6   :  { %p2997_p2 = pnand %p2995_p1, %p2992_p0 }
   0x8   :  { %3000 = shalt.err (!%p2997_p2)
}
   0x9   :  { %s3001_s18 = scalar_lea.vmem %s25_s10, 12288  ;;  %p3006_p4 = scmp.lt.s32.totalorder %s25_s10, %s25_s10 }
   0xa   :  { %p3002_p3 = scmp.ne.s32.totalorder %s25_s10, %s3001_s18  ;;  %p3007_p5 = scmp.lt.s32.totalorder %s3001_s18, %s3001_s18 }
   0xc   :  { %p3008_p6 = por %p3007_p5, %p3006_p4 }
   0xe   :  { %p3009_p7 = pnand %p3008_p6, %p3002_p3 }
  0x10   :  { %3012 = shalt.err (!%p3009_p7)
}
  0x11   :  { %s3064_s19 = smov 384   ;;  %s3065_s20 = smov 24  }
  0x12   :  { %30 = dma.hbm_to_vmem [thread:$0]  %s3684_s1, 12288, %s25_s10, [#allocation3], %s3064_s19, %s3064_s19, %s3065_s20  }
  0x13   :  { %s3066_s23 = smov [#allocation5]   ;;  %s3013_s27 = scalar_lea.hbm %s3685_s2, 12288 }
  0x14   :  { %s36_s24 = sshll.u32 %s3066_s23, 4  ;;  %p3014_p8 = scmp.ne.s32.totalorder %s3685_s2, %s3013_s27  ;;  %s37_s24 = int_to_ptr.vmem [resolvable:$true] %s36_s24 }
  0x15   :  { %p3017_p9 = scmp.lt.u32.totalorder %s3013_s27, %s3685_s2 }
  0x17   :  { %p3019_p10 = pnand %p3017_p9, %p3014_p8 }
  0x19   :  { %3022 = shalt.err (!%p3019_p10)
}
  0x1a   :  { %s3023_s12 = scalar_lea.vmem %s37_s24, 12288  ;;  %p3028_p12 = scmp.lt.s32.totalorder %s37_s24, %s37_s24 }
  0x1b   :  { %p3024_p11 = scmp.ne.s32.totalorder %s37_s24, %s3023_s12  ;;  %p3029_p13 = scmp.lt.s32.totalorder %s3023_s12, %s3023_s12 }
  0x1d   :  { %p3030_p0 = por %p3029_p13, %p3028_p12 }
  0x1f   :  { %p3031_p1 = pnand %p3030_p0, %p3024_p11 }
  0x21   :  { %3034 = shalt.err (!%p3031_p1)
}
  0x22   :  { %42 = dma.hbm_to_vmem [thread:$0]  %s3685_s2, 12288, %s37_s24, [#allocation6], %s3064_s19, %s3064_s19, %s3065_s20  }
  0x23   :  { %3057 = dma.done.wait [#allocation3], 12288  }
  0x24   :  { %3058 = vsyncadd [#allocation3], 4294955008 }
  0x25   :  { %3059 = dma.done.wait [#allocation6], 12288  }
  0x26   :  { %3060 = vsyncadd [#allocation6], 4294955008  ;;  %v2691_v0 = vld [vmem:[#allocation2 + $0x4] ss:$24 sps:$4 sm:$0xff]   ;;  %v2693_v1 = vld [vmem:[#allocation2] ss:$24 sps:$4 sm:$0xff]  }
  0x27   :  { %710 = vmatprep.subr.bf16.mxu0 %v2691_v0  ;;  %v2694_v2 = vld [vmem:[#allocation2 + $0xc] ss:$24 sps:$4 sm:$0xff]   ;;  %v2698_v4 = vld [vmem:[#allocation2 + $0x8] ss:$24 sps:$4 sm:$0xff]   ;;  %v2700_v6 = vld [vmem:[#allocation2 + $0x3c] ss:$24 sps:$4 sm:$0xff]  }
  0x28   :  { %711 = vmatpush1.bf16.msra.mxu0 %v2693_v1  ;;  %v2696_v3 = vld [vmem:[#allocation2 + $0x34] ss:$24 sps:$4 sm:$0xff]   ;;  %v2699_v5 = vld [vmem:[#allocation2 + $0x30] ss:$24 sps:$4 sm:$0xff]   ;;  %763 = vmatprep.subr.bf16.mxu1 %v2694_v2  ;;  %v2702_v7 = vld [vmem:[#allocation2 + $0x64] ss:$24 sps:$4 sm:$0xff]  }
  0x29   :  { %712 = vmatprep.subr.bf16.mxu0 %v2696_v3  ;;  %764 = vmatpush1.bf16.msra.mxu1 %v2698_v4  ;;  %v2704_v8 = vld [vmem:[#allocation2 + $0x38] ss:$24 sps:$4 sm:$0xff]   ;;  %v2706_v10 = vld [vmem:[#allocation2 + $0x6c] ss:$24 sps:$4 sm:$0xff]   ;;  %v2710_v12 = vld [vmem:[#allocation2 + $0x68] ss:$24 sps:$4 sm:$0xff]  }
  0x2a   :  { %765 = vmatprep.subr.bf16.mxu1 %v2700_v6  ;;  %v2705_v9 = vld [vmem:[#allocation2 + $0x60] ss:$24 sps:$4 sm:$0xff]   ;;  %v2708_v11 = vld [vmem:[#allocation2 + $0x94] ss:$24 sps:$4 sm:$0xff]   ;;  %v2711_v14 = vld [vmem:[#allocation2 + $0x90] ss:$24 sps:$4 sm:$0xff]  }
  0x2b   :  { %v2712_v13 = vld [vmem:[#allocation2 + $0x9c] ss:$24 sps:$4 sm:$0xff]   ;;  %v2716_v16 = vld [vmem:[#allocation2 + $0x98] ss:$24 sps:$4 sm:$0xff]   ;;  %v2718_v17 = vld [vmem:[#allocation2 + $0xcc] ss:$24 sps:$4 sm:$0xff]  }
  0x2c   :  { %713 = vmatpush1.bf16.msra.mxu0 %v2699_v5  ;;  %v2714_v15 = vld [vmem:[#allocation2 + $0xc4] ss:$24 sps:$4 sm:$0xff]   ;;  %v2717_v18 = vld [vmem:[#allocation2 + $0xc0] ss:$24 sps:$4 sm:$0xff]   ;;  %v2720_v19 = vld [vmem:[#allocation2 + $0xf4] ss:$24 sps:$4 sm:$0xff]  }
  0x2d   :  { %714 = vmatprep.subr.bf16.mxu0 %v2702_v7  ;;  %766 = vmatpush1.bf16.msra.mxu1 %v2704_v8  ;;  %v2722_v20 = vld [vmem:[#allocation2 + $0xc8] ss:$24 sps:$4 sm:$0xff]   ;;  %v2724_v21 = vld [vmem:[#allocation2 + $0xfc] ss:$24 sps:$4 sm:$0xff]   ;;  %v2728_v24 = vld [vmem:[#allocation2 + $0xf8] ss:$24 sps:$4 sm:$0xff]  }
  0x2e   :  { %767 = vmatprep.subr.bf16.mxu1 %v2706_v10  ;;  %v2723_v22 = vld [vmem:[#allocation2 + $0xf0] ss:$24 sps:$4 sm:$0xff]   ;;  %v2726_v23 = vld [vmem:[#allocation2 + $0x124] ss:$24 sps:$4 sm:$0xff]   ;;  %v2729_v26 = vld [vmem:[#allocation2 + $0x120] ss:$24 sps:$4 sm:$0xff]  }
  0x2f   :  { %v2730_v25 = vld [vmem:[#allocation2 + $0x12c] ss:$24 sps:$4 sm:$0xff]   ;;  %v2734_v28 = vld [vmem:[#allocation2 + $0x128] ss:$24 sps:$4 sm:$0xff]   ;;  %v2736_v29 = vld [vmem:[#allocation2 + $0x15c] ss:$24 sps:$4 sm:$0xff]  }
  0x30   :  { %715 = vmatpush1.bf16.msra.mxu0 %v2705_v9  ;;  %v2732_v27 = vld [vmem:[#allocation2 + $0x154] ss:$24 sps:$4 sm:$0xff]   ;;  %v2735_v30 = vld [vmem:[#allocation2 + $0x150] ss:$24 sps:$4 sm:$0xff]   ;;  %v2738_v31 = vld [vmem:[#allocation2 + $0x184] ss:$24 sps:$4 sm:$0xff]  }
  0x31   :  { %716 = vmatprep.subr.bf16.mxu0 %v2708_v11  ;;  %768 = vmatpush1.bf16.msra.mxu1 %v2710_v12  ;;  %v2740_v32 = vld [vmem:[#allocation2 + $0x158] ss:$24 sps:$4 sm:$0xff]   ;;  %v2742_v33 = vld [vmem:[#allocation2 + $0x18c] ss:$24 sps:$4 sm:$0xff]   ;;  %v2746_v36 = vld [vmem:[#allocation2 + $0x188] ss:$24 sps:$4 sm:$0xff]  }
  0x32   :  { %769 = vmatprep.subr.bf16.mxu1 %v2712_v13  ;;  %v2741_v34 = vld [vmem:[#allocation2 + $0x180] ss:$24 sps:$4 sm:$0xff]   ;;  %v2744_v35 = vld [vmem:[#allocation2 + $0x1b4] ss:$24 sps:$4 sm:$0xff]   ;;  %v2747_v38 = vld [vmem:[#allocation2 + $0x1b0] ss:$24 sps:$4 sm:$0xff]  }
  0x33   :  { %v2748_v37 = vld [vmem:[#allocation2 + $0x1bc] ss:$24 sps:$4 sm:$0xff]   ;;  %v2752_v40 = vld [vmem:[#allocation2 + $0x1b8] ss:$24 sps:$4 sm:$0xff]   ;;  %v2754_v41 = vld [vmem:[#allocation2 + $0x1ec] ss:$24 sps:$4 sm:$0xff]  }
  0x34   :  { %717 = vmatpush1.bf16.msra.mxu0 %v2711_v14  ;;  %v2750_v39 = vld [vmem:[#allocation2 + $0x1e4] ss:$24 sps:$4 sm:$0xff]   ;;  %v2753_v42 = vld [vmem:[#allocation2 + $0x1e0] ss:$24 sps:$4 sm:$0xff]   ;;  %v2756_v43 = vld [vmem:[#allocation2 + $0x214] ss:$24 sps:$4 sm:$0xff]  }
  0x35   :  { %718 = vmatprep.subr.bf16.mxu0 %v2714_v15  ;;  %770 = vmatpush1.bf16.msra.mxu1 %v2716_v16  ;;  %v2758_v44 = vld [vmem:[#allocation2 + $0x1e8] ss:$24 sps:$4 sm:$0xff]   ;;  %v64_v46 = vld [vmem:[%s3683_s0 + $0x18] sm:$0xff]  ;;  %v2766_v52 = vld [vmem:[#allocation2 + $0x24c] ss:$24 sps:$4 sm:$0xff]   ;;  %vm979_vm6 = vcmask 1040384  }
  0x36   :  { %771 = vmatprep.subr.bf16.mxu1 %v2718_v17  ;;  %v62_v45 = vld [vmem:[%s3683_s0 + $0x8] sm:$0xff]  ;;  %v2760_v47 = vld [vmem:[#allocation2 + $0x21c] ss:$24 sps:$4 sm:$0xff]   ;;  %v2764_v51 = vld [vmem:[#allocation2 + $0x218] ss:$24 sps:$4 sm:$0xff]   ;;  %vm1126_vm7 = vcmask 130048  }
  0x37   :  { %v3152_v48 = vpack.c.bf16 %v64_v46, %v62_v45  ;;  %v2759_v49 = vld [vmem:[#allocation2 + $0x210] ss:$24 sps:$4 sm:$0xff]   ;;  %v2762_v50 = vld [vmem:[#allocation2 + $0x244] ss:$24 sps:$4 sm:$0xff]   ;;  %v2765_v53 = vld [vmem:[#allocation2 + $0x240] ss:$24 sps:$4 sm:$0xff]  }
  0x38   :  { %719 = vmatpush1.bf16.msra.mxu0 %v2717_v18  ;;  %v2768_v54 = vld [vmem:[#allocation2 + $0x274] ss:$24 sps:$4 sm:$0xff]   ;;  %v2770_v55 = vld [vmem:[#allocation2 + $0x248] ss:$24 sps:$4 sm:$0xff]   ;;  %v2774_v58 = vld [vmem:[#allocation2 + $0x2a4] ss:$24 sps:$4 sm:$0xff]  }
  0x39   :  { %720 = vmatprep.subr.bf16.mxu0 %v2720_v19  ;;  %772 = vmatpush1.bf16.msra.mxu1 %v2722_v20  ;;  %v2772_v56 = vld [vmem:[#allocation2 + $0x27c] ss:$24 sps:$4 sm:$0xff]   ;;  %v2771_v57 = vld [vmem:[#allocation2 + $0x270] ss:$24 sps:$4 sm:$0xff]   ;;  %v2778_v60 = vld [vmem:[#allocation2 + $0x2ac] ss:$24 sps:$4 sm:$0xff]  }
  0x3a   :  { %773 = vmatprep.subr.bf16.mxu1 %v2724_v21  ;;  %742 = vmatprep.mubr.bf16.mxu0 %v3152_v48  ;;  %v2776_v59 = vld [vmem:[#allocation2 + $0x278] ss:$24 sps:$4 sm:$0xff]   ;;  %v2780_v62 = vld [vmem:[#allocation2 + $0x2d4] ss:$24 sps:$4 sm:$0xff]   ;;  %v2782_v63 = vld [vmem:[#allocation2 + $0x2a8] ss:$24 sps:$4 sm:$0xff]  }
  0x3b   :  { %795 = vmatprep.mubr.bf16.mxu1 %v3152_v48  ;;  %v2777_v61 = vld [vmem:[#allocation2 + $0x2a0] ss:$24 sps:$4 sm:$0xff]   ;;  %v2783_v0 = vld [vmem:[#allocation2 + $0x2d0] ss:$24 sps:$4 sm:$0xff]   ;;  %v2784_v1 = vld [vmem:[#allocation2 + $0x2dc] ss:$24 sps:$4 sm:$0xff]  }
  0x3c   :  { %721 = vmatpush1.bf16.msra.mxu0 %v2723_v22  ;;  %v61_v2 = vld [vmem:[%s3683_s0] sm:$0xff]  ;;  %v63_v3 = vld [vmem:[%s3683_s0 + $0x10] sm:$0xff]  ;;  %v66_v5 = vld [vmem:[%s3683_s0 + $0x28] sm:$0xff]  ;;  %s3069_s18 = smov [#allocation7]  }
  0x3d   :  { %722 = vmatprep.subr.bf16.mxu0 %v2726_v23  ;;  %774 = vmatpush1.bf16.msra.mxu1 %v2728_v24  ;;  %v2789_v4 = vld [vmem:[#allocation2 + $0x14] ss:$24 sps:$4 sm:$0xff]   ;;  %v68_v6 = vld [vmem:[%s3683_s0 + $0x38] sm:$0xff]  ;;  %v3168_v8 = vpack.c.bf16 %v63_v3, %v61_v2  ;;  %v2787_v9 = vld [vmem:[#allocation2 + $0x10] ss:$24 sps:$4 sm:$0xff]   ;;  %s2333_s19 = sshll.u32 %s3069_s18, 4  ;;  %s2334_s19 = int_to_ptr.vmem [resolvable:$true] %s2333_s19 }
  0x3e   :  { %775 = vmatprep.subr.bf16.mxu1 %v2730_v25  ;;  %v2786_v7 = vld [vmem:[#allocation2 + $0x2d8] ss:$24 sps:$4 sm:$0xff]   ;;  %v3170_v10 = vpack.c.bf16 %v68_v6, %v66_v5  ;;  %v2792_v11 = vld [vmem:[#allocation2 + $0x44] ss:$24 sps:$4 sm:$0xff]   ;;  %v2795_v15 = vld [vmem:[#allocation2 + $0x74] ss:$24 sps:$4 sm:$0xff]   ;;  %p3040_p3 = scmp.lt.s32.totalorder %s2334_s19, %s2334_s19 }
  0x3f   :  { %v2790_v12 = vld [vmem:[#allocation2 + $0x40] ss:$24 sps:$4 sm:$0xff]   ;;  %v67_v14 = vld [vmem:[%s3683_s0 + $0x30] sm:$0xff]  ;;  %v2798_v18 = vld [vmem:[#allocation2 + $0xa4] ss:$24 sps:$4 sm:$0xff]   ;;  %s3035_s27 = scalar_lea.vmem %s2334_s19, 1024 }
  0x40   :  { %723 = vmatpush1.bf16.msra.mxu0 %v2729_v26  ;;  %v65_v13 = vld [vmem:[%s3683_s0 + $0x20] sm:$0xff]  ;;  %v2793_v16 = vld [vmem:[#allocation2 + $0x70] ss:$24 sps:$4 sm:$0xff]   ;;  %v2801_v20 = vld [vmem:[#allocation2 + $0xd4] ss:$24 sps:$4 sm:$0xff]   ;;  %p3036_p2 = scmp.ne.s32.totalorder %s2334_s19, %s3035_s27  ;;  %p3041_p4 = scmp.lt.s32.totalorder %s3035_s27, %s3035_s27 }
  0x41   :  { %724 = vmatprep.subr.bf16.mxu0 %v2732_v27  ;;  %776 = vmatpush1.bf16.msra.mxu1 %v2734_v28  ;;  %v132_v17 = vpack.c.bf16 %v67_v14, %v65_v13  ;;  %v2796_v19 = vld [vmem:[#allocation2 + $0xa0] ss:$24 sps:$4 sm:$0xff]   ;;  %v2799_v21 = vld [vmem:[#allocation2 + $0xd0] ss:$24 sps:$4 sm:$0xff]   ;;  %v2804_v22 = vld [vmem:[#allocation2 + $0x104] ss:$24 sps:$4 sm:$0xff]  }
  0x42   :  { %777 = vmatprep.subr.bf16.mxu1 %v2736_v29  ;;  %v2802_v23 = vld [vmem:[#allocation2 + $0x100] ss:$24 sps:$4 sm:$0xff]   ;;  %v2807_v24 = vld [vmem:[#allocation2 + $0x134] ss:$24 sps:$4 sm:$0xff]   ;;  %v2805_v25 = vld [vmem:[#allocation2 + $0x130] ss:$24 sps:$4 sm:$0xff]   ;;  %p3042_p5 = por %p3041_p4, %p3040_p3 }
  0x43   :  { %v2810_v26 = vld [vmem:[#allocation2 + $0x164] ss:$24 sps:$4 sm:$0xff]   ;;  %v2808_v27 = vld [vmem:[#allocation2 + $0x160] ss:$24 sps:$4 sm:$0xff]   ;;  %v2813_v28 = vld [vmem:[#allocation2 + $0x194] ss:$24 sps:$4 sm:$0xff]  }
  0x44   :  { %725 = vmatpush1.bf16.msra.mxu0 %v2735_v30  ;;  %v2811_v29 = vld [vmem:[#allocation2 + $0x190] ss:$24 sps:$4 sm:$0xff]   ;;  %v2816_v30 = vld [vmem:[#allocation2 + $0x1c4] ss:$24 sps:$4 sm:$0xff]   ;;  %p3043_p6 = pnand %p3042_p5, %p3036_p2 }
  0x45   :  { %726 = vmatprep.subr.bf16.mxu0 %v2738_v31  ;;  %778 = vmatpush1.bf16.msra.mxu1 %v2740_v32  ;;  %v2814_v31 = vld [vmem:[#allocation2 + $0x1c0] ss:$24 sps:$4 sm:$0xff]   ;;  %v2819_v32 = vld [vmem:[#allocation2 + $0x1f4] ss:$24 sps:$4 sm:$0xff]  }
  0x46   :  { %779 = vmatprep.subr.bf16.mxu1 %v2742_v33  ;;  %v2817_v33 = vld [vmem:[#allocation2 + $0x1f0] ss:$24 sps:$4 sm:$0xff]   ;;  %v989_v2 = vld [vmem:[%s3686_s3 + $0x38] sm:$0xff] }
  0x47   :  { %v999_v45 = vld [vmem:[%s3686_s3 + $0x88] sm:$0xff]  ;;  %v993_v14 = vld [vmem:[%s3686_s3 + $0x58] sm:$0xff] }
  0x48   :  { %727 = vmatpush1.bf16.msra.mxu0 %v2741_v34  ;;  %v2822_v34 = vld [vmem:[#allocation2 + $0x224] ss:$24 sps:$4 sm:$0xff]   ;;  %v1007_v5 = vld [vmem:[%s3686_s3 + $0xc8] sm:$0xff] }
  0x49   :  { %728 = vmatprep.subr.bf16.mxu0 %v2744_v35  ;;  %780 = vmatpush1.bf16.msra.mxu1 %v2746_v36  ;;  %v2820_v35 = vld [vmem:[#allocation2 + $0x220] ss:$24 sps:$4 sm:$0xff]   ;;  %v2825_v36 = vld [vmem:[#allocation2 + $0x254] ss:$24 sps:$4 sm:$0xff]  }
  0x4a   :  { %781 = vmatprep.subr.bf16.mxu1 %v2748_v37  ;;  %v2823_v37 = vld [vmem:[#allocation2 + $0x250] ss:$24 sps:$4 sm:$0xff]  }
  0x4c   :  { %729 = vmatpush1.bf16.msra.mxu0 %v2747_v38  ;;  %v2828_v38 = vld [vmem:[#allocation2 + $0x284] ss:$24 sps:$4 sm:$0xff]  }
  0x4d   :  { %730 = vmatprep.subr.bf16.mxu0 %v2750_v39  ;;  %782 = vmatpush1.bf16.msra.mxu1 %v2752_v40  ;;  %v2826_v39 = vld [vmem:[#allocation2 + $0x280] ss:$24 sps:$4 sm:$0xff]   ;;  %v2831_v40 = vld [vmem:[#allocation2 + $0x2b4] ss:$24 sps:$4 sm:$0xff]  }
  0x4e   :  { %783 = vmatprep.subr.bf16.mxu1 %v2754_v41  ;;  %v2829_v41 = vld [vmem:[#allocation2 + $0x2b0] ss:$24 sps:$4 sm:$0xff]  }
  0x50   :  { %731 = vmatpush1.bf16.msra.mxu0 %v2753_v42  ;;  %v2834_v42 = vld [vmem:[#allocation2 + $0x2e4] ss:$24 sps:$4 sm:$0xff]  }
  0x51   :  { %732 = vmatprep.subr.bf16.mxu0 %v2756_v43  ;;  %784 = vmatpush1.bf16.msra.mxu1 %v2758_v44  ;;  %v2832_v43 = vld [vmem:[#allocation2 + $0x2e0] ss:$24 sps:$4 sm:$0xff]  }
  0x52   :  { %785 = vmatprep.subr.bf16.mxu1 %v2760_v47  ;;  %v998_v44 = vld [vmem:[%s3686_s3 + $0x80] sm:$0xff] }
  0x53   :  { %v3191_v46 = vpack.c.bf16 %v999_v45, %v998_v44  ;;  %v982_v47 = vld [vmem:[%s3686_s3] sm:$0xff] }
  0x54   :  { %733 = vmatpush1.bf16.msra.mxu0 %v2759_v49 }
  0x55   :  { %734 = vmatprep.subr.bf16.mxu0 %v2762_v50  ;;  %786 = vmatpush1.bf16.msra.mxu1 %v2764_v51  ;;  %v1000_v50 = vld [vmem:[%s3686_s3 + $0x90] sm:$0xff]  ;;  %v1001_v51 = vld [vmem:[%s3686_s3 + $0x98] sm:$0xff] }
  0x56   :  { %787 = vmatprep.subr.bf16.mxu1 %v2766_v52  ;;  %v3209_v52 = vpack.c.bf16 %v1001_v51, %v1000_v50 }
  0x58   :  { %735 = vmatpush1.bf16.msra.mxu0 %v2765_v53  ;;  %v984_v53 = vld [vmem:[%s3686_s3 + $0x10] sm:$0xff] }
  0x59   :  { %736 = vmatprep.subr.bf16.mxu0 %v2768_v54  ;;  %788 = vmatpush1.bf16.msra.mxu1 %v2770_v55  ;;  %v985_v54 = vld [vmem:[%s3686_s3 + $0x18] sm:$0xff] }
  0x5a   :  { %789 = vmatprep.subr.bf16.mxu1 %v2772_v56  ;;  %v3218_v55 = vpack.c.bf16 %v985_v54, %v984_v53  ;;  %v1002_v56 = vld [vmem:[%s3686_s3 + $0xa0] sm:$0xff] }
  0x5c   :  { %737 = vmatpush1.bf16.msra.mxu0 %v2771_v57  ;;  %v1003_v57 = vld [vmem:[%s3686_s3 + $0xa8] sm:$0xff] }
  0x5d   :  { %738 = vmatprep.subr.bf16.mxu0 %v2774_v58  ;;  %790 = vmatpush1.bf16.msra.mxu1 %v2776_v59  ;;  %v3227_v58 = vpack.c.bf16 %v1003_v57, %v1002_v56  ;;  %v986_v59 = vld [vmem:[%s3686_s3 + $0x20] sm:$0xff] }
  0x5e   :  { %791 = vmatprep.subr.bf16.mxu1 %v2778_v60  ;;  %v987_v60 = vld [vmem:[%s3686_s3 + $0x28] sm:$0xff] }
  0x60   :  { %739 = vmatpush1.bf16.msra.mxu0 %v2777_v61  ;;  %v3235_v61 = vpack.c.bf16 %v987_v60, %v986_v59 }
  0x61   :  { %740 = vmatprep.subr.bf16.mxu0 %v2780_v62  ;;  %792 = vmatpush1.bf16.msra.mxu1 %v2782_v63  ;;  %v1004_v62 = vld [vmem:[%s3686_s3 + $0xb0] sm:$0xff]  ;;  %v1005_v63 = vld [vmem:[%s3686_s3 + $0xb8] sm:$0xff] }
  0x62   :  { %793 = vmatprep.subr.bf16.mxu1 %v2784_v1  ;;  %v988_v1 = vld [vmem:[%s3686_s3 + $0x30] sm:$0xff] }
  0x63   :  { %v3253_v3 = vpack.c.bf16 %v989_v2, %v988_v1 }
  0x64   :  { %741 = vmatpush1.bf16.msra.mxu0 %v2783_v0  ;;  %v3245_v0 = vpack.c.bf16 %v1005_v63, %v1004_v62 }
  0x65   :  { %816 = vmatprep.subr.bf16.mxu0 %v2789_v4  ;;  %794 = vmatpush1.bf16.msra.mxu1 %v2786_v7  ;;  %v1006_v4 = vld [vmem:[%s3686_s3 + $0xc0] sm:$0xff] }
  0x66   :  { %2611 = vmatprep.subr.bf16.mxu1 %v3191_v46  ;;  %v3263_v6 = vpack.c.bf16 %v1007_v5, %v1006_v4  ;;  %v990_v7 = vld [vmem:[%s3686_s3 + $0x40] sm:$0xff] }
  0x67   :  { %743 = vmatmul.mubr.bf16.vlgmr.msra.gmra.mrb[0].mxu0 %v3168_v8 }
  0x68   :  { %817 = vmatpush1.bf16.msra.mxu0 %v2787_v9  ;;  %752 = vmatprep.mubr.bf16.mxu0 %v3170_v10 }
  0x69   :  { %796 = vmatmul.mubr.bf16.vlgmr.msra.gmra.mrb[0].mxu1 %v3168_v8  ;;  %818 = vmatprep.subr.bf16.mxu0 %v2792_v11  ;;  %v1009_v11 = vld [vmem:[%s3686_s3 + $0xd8] sm:$0xff] }
  0x6a   :  { %805 = vmatprep.mubr.bf16.mxu1 %v3170_v10 }
  0x6c   :  { %819 = vmatpush1.bf16.msra.mxu0 %v2790_v12  ;;  %v992_v12 = vld [vmem:[%s3686_s3 + $0x50] sm:$0xff] }
  0x6d   :  { %820 = vmatprep.subr.bf16.mxu0 %v2795_v15  ;;  %v1010_v15 = vld [vmem:[%s3686_s3 + $0xe0] sm:$0xff] }
  0x6f   :  { %753 = vmatmul.mubr.bf16.gmra.mrb[4].mxu0 %v132_v17 }
  0x70   :  { %821 = vmatpush1.bf16.msra.mxu0 %v2793_v16  ;;  %848 = vmatprep.mubr.bf16.mxu0 %v3152_v48  ;;  %v983_v48 = vld [vmem:[%s3686_s3 + $0x8] sm:$0xff] }
  0x71   :  { %806 = vmatmul.mubr.bf16.gmra.mrb[4].mxu1 %v132_v17  ;;  %822 = vmatprep.subr.bf16.mxu0 %v2798_v18  ;;  %v3199_v49 = vpack.c.bf16 %v983_v48, %v982_v47  ;;  %v1011_v16 = vld [vmem:[%s3686_s3 + $0xe8] sm:$0xff] }
  0x72   :  { %v3298_v18 = vpack.c.bf16 %v1011_v16, %v1010_v15 }
  0x73   :  { %2613 = vmatpush3.bf16.msra.mxu1 %v3199_v49 }
  0x74   :  { %823 = vmatpush1.bf16.msra.mxu0 %v2796_v19  ;;  %2615 = vmatprep.subr.bf16.mxu1 %v3209_v52  ;;  %v994_v19 = vld [vmem:[%s3686_s3 + $0x60] sm:$0xff] }
  0x75   :  { %824 = vmatprep.subr.bf16.mxu0 %v2801_v20  ;;  %v995_v20 = vld [vmem:[%s3686_s3 + $0x68] sm:$0xff] }
  0x77   :  { %2617 = vmatpush3.bf16.msra.mxu1 %v3218_v55 }
  0x78   :  { %825 = vmatpush1.bf16.msra.mxu0 %v2799_v21  ;;  %2619 = vmatprep.subr.bf16.mxu1 %v3227_v58  ;;  %v1012_v21 = vld [vmem:[%s3686_s3 + $0xf0] sm:$0xff] }
  0x79   :  { %826 = vmatprep.subr.bf16.mxu0 %v2804_v22  ;;  %v1013_v22 = vld [vmem:[%s3686_s3 + $0xf8] sm:$0xff] }
  0x7b   :  { %2621 = vmatpush3.bf16.msra.mxu1 %v3235_v61 }
  0x7c   :  { %827 = vmatpush1.bf16.msra.mxu0 %v2802_v23  ;;  %2623 = vmatprep.subr.bf16.mxu1 %v3245_v0  ;;  %v3313_v23 = vpack.c.bf16 %v995_v20, %v994_v19 }
  0x7d   :  { %828 = vmatprep.subr.bf16.mxu0 %v2807_v24  ;;  %v3316_v24 = vpack.c.bf16 %v1013_v22, %v1012_v21 }
  0x7f   :  { %2625 = vmatpush3.bf16.msra.mxu1 %v3253_v3 }
  0x80   :  { %829 = vmatpush1.bf16.msra.mxu0 %v2805_v25  ;;  %2627 = vmatprep.subr.bf16.mxu1 %v3263_v6  ;;  %v996_v25 = vld [vmem:[%s3686_s3 + $0x70] sm:$0xff] }
  0x81   :  { %830 = vmatprep.subr.bf16.mxu0 %v2810_v26  ;;  %v997_v26 = vld [vmem:[%s3686_s3 + $0x78] sm:$0xff] }
  0x84   :  { %831 = vmatpush1.bf16.msra.mxu0 %v2808_v27  ;;  %v3325_v27 = vpack.c.bf16 %v997_v26, %v996_v25 }
  0x85   :  { %832 = vmatprep.subr.bf16.mxu0 %v2813_v28  ;;  %v69_v28 = vlaneseq }
  0x88   :  { %833 = vmatpush1.bf16.msra.mxu0 %v2811_v29  ;;  %v3329_v29 = vshrl.u32 %v69_v28, 7 }
  0x89   :  { %834 = vmatprep.subr.bf16.mxu0 %v2816_v30 }
  0x8a   :  { %vm877_vm0 = vcmp.lt.s32.totalorder %v3329_v29, 1  ;;  %v78_v50 = vand.u32 15, %v3329_v29  ;;  %vm910_vm3 = vcmp.lt.s32.totalorder %v3329_v29, 7 }
  0x8c   :  { %835 = vmatpush1.bf16.msra.mxu0 %v2814_v31  ;;  %vm3346_vm2 = vcmp.ne.s32.totalorder %v78_v50, 0 }
  0x8d   :  { %836 = vmatprep.subr.bf16.mxu0 %v2819_v32 }
  0x90   :  { %837 = vmatpush1.bf16.msra.mxu0 %v2817_v33  ;;  %v72_v33 = vadd.s32 16, %v3329_v29 }
  0x91   :  { %838 = vmatprep.subr.bf16.mxu0 %v2822_v34 }
  0x92   :  { %v92_v44 = vand.u32 15, %v72_v33 }
  0x94   :  { %839 = vmatpush1.bf16.msra.mxu0 %v2820_v35  ;;  %vm3342_vm1 = vcmp.ne.s32.totalorder %v92_v44, 0 }
  0x95   :  { %840 = vmatprep.subr.bf16.mxu0 %v2825_v36 }
  0x98   :  { %841 = vmatpush1.bf16.msra.mxu0 %v2823_v37 }
  0x99   :  { %842 = vmatprep.subr.bf16.mxu0 %v2828_v38 }
  0x9c   :  { %843 = vmatpush1.bf16.msra.mxu0 %v2826_v39 }
  0x9d   :  { %844 = vmatprep.subr.bf16.mxu0 %v2831_v40 }
  0xa0   :  { %845 = vmatpush1.bf16.msra.mxu0 %v2829_v41 }
  0xa1   :  { %846 = vmatprep.subr.bf16.mxu0 %v2834_v42 }
  0xa4   :  { %847 = vmatpush1.bf16.msra.mxu0 %v2832_v43 }
  0xa7   :  { %849 = vmatmul.mubr.bf16.vlgmr.msra.gmra.mrb[8].mxu0 %v3168_v8  ;;  %v991_v8 = vld [vmem:[%s3686_s3 + $0x48] sm:$0xff] }
  0xa8   :  { %858 = vmatprep.mubr.bf16.mxu0 %v3170_v10  ;;  %v3271_v9 = vpack.c.bf16 %v991_v8, %v990_v7  ;;  %v1008_v10 = vld [vmem:[%s3686_s3 + $0xd0] sm:$0xff] }
  0xa9   :  { %v3283_v13 = vpack.c.bf16 %v1009_v11, %v1008_v10 }
  0xaa   :  { %2629 = vmatpush3.bf16.msra.mxu1 %v3271_v9 }
  0xab   :  { %2631 = vmatprep.subr.bf16.mxu1 %v3283_v13 }
  0xaf   :  { %859 = vmatmul.mubr.bf16.gmra.mrb[12].mxu0 %v132_v17  ;;  %v3295_v17 = vpack.c.bf16 %v993_v14, %v992_v12 }
  0xb1   :  { %2633 = vmatpush3.bf16.msra.mxu1 %v3295_v17 }
  0xb2   :  { %2635 = vmatprep.subr.bf16.mxu1 %v3298_v18 }
  0xb5   :  { %2637 = vmatpush3.bf16.msra.mxu1 %v3313_v23 }
  0xb6   :  { %2639 = vmatprep.subr.bf16.mxu1 %v3316_v24 }
  0xb9   :  { %2641 = vmatpush3.bf16.msra.mxu1 %v3325_v27 }
 0x13a   :  { %v744_v30 = vpop.f32.mrb[0].mxu0 }
 0x13b   :  { %v869_v31 = vrot.slane %v744_v30, 7  ;;  %v746_v32 = vpop.f32.mrb[1].mxu0 }
 0x13c   :  { %v748_v34 = vpop.f32.mrb[2].mxu0  ;;  %v797_v35 = vpop.f32.mrb[0].mxu1  ;;  %v870_v39 = vrot.slane %v746_v32, 7 }
 0x13d   :  { %v871_v36 = vrot.slane %v748_v34, 7  ;;  %v750_v37 = vpop.f32.mrb[3].mxu0  ;;  %v799_v38 = vpop.f32.mrb[1].mxu1  ;;  %v71_v34 = vadd.s32 8, %v3329_v29 }
 0x13e   :  { %v872_v40 = vrot.slane %v750_v37, 7  ;;  %v801_v41 = vpop.f32.mrb[2].mxu1 }
 0x13f   :  { %v882_v42 = vsel %vm877_vm0, %v869_v31, %v871_v36  ;;  %v803_v43 = vpop.f32.mrb[3].mxu1  ;;  %v85_v44 = vand.u32 15, %v71_v34 }
 0x140   :  { %v3335_v45 = vadd.f32 %v882_v42, %v801_v41  ;;  %v883_v47 = vsel %vm877_vm0, %v870_v39, %v872_v40 }
 0x141   :  { %v3339_v48 = vadd.f32 %v883_v47, %v803_v43  ;;  %vm3381_vm4 = vcmp.ne.s32.totalorder %v85_v44, 15 }
 0x142   :  { %v754_v51 = vpop.f32.mrb[4].mxu0 }
 0x143   :  { %v873_v53 = vrot.slane %v754_v51, 7  ;;  %v756_v54 = vpop.f32.mrb[5].mxu0 }
 0x144   :  { %v874_v57 = vrot.slane %v756_v54, 7  ;;  %v758_v59 = vpop.f32.mrb[6].mxu0  ;;  %v807_v60 = vpop.f32.mrb[4].mxu1 }
 0x145   :  { %v875_v63 = vrot.slane %v758_v59, 7  ;;  %v760_v1 = vpop.f32.mrb[7].mxu0  ;;  %v880_v2 = vsel %vm877_vm0, %v871_v36, %v873_v53  ;;  %v809_v4 = vpop.f32.mrb[5].mxu1 }
 0x146   :  { %v876_v5 = vrot.slane %v760_v1, 7  ;;  %v890_v7 = vsel %vm3342_vm1, %v880_v2, 0.0  ;;  %v881_v8 = vsel %vm877_vm0, %v872_v40, %v874_v57  ;;  %v811_v10 = vpop.f32.mrb[6].mxu1 }
 0x147   :  { %v884_v11 = vsel %vm877_vm0, %v875_v63, %v869_v31  ;;  %v898_v12 = vadd.f32 %v890_v7, %v807_v60  ;;  %v891_v14 = vsel %vm3342_vm1, %v881_v8, 0.0  ;;  %v878_v15 = vsel %vm877_vm0, %v873_v53, %v875_v63  ;;  %v813_v16 = vpop.f32.mrb[7].mxu1 }
 0x148   :  { %v886_v19 = vsel %vm3346_vm2, %v884_v11, 0.0  ;;  %v885_v20 = vsel %vm877_vm0, %v876_v5, %v870_v39  ;;  %v899_v21 = vadd.f32 %v891_v14, %v809_v4  ;;  %v900_v22 = vadd.f32 %v878_v15, %v811_v10 }
 0x149   :  { %v894_v25 = vadd.f32 %v886_v19, %v797_v35  ;;  %v887_v26 = vsel %vm3346_vm2, %v885_v20, 0.0  ;;  %v879_v28 = vsel %vm877_vm0, %v874_v57, %v876_v5  ;;  %v73_v35 = vadd.s32 24, %v3329_v29 }
 0x14a   :  { %v895_v30 = vadd.f32 %v887_v26, %v799_v38  ;;  %v901_v31 = vadd.f32 %v879_v28, %v813_v16 }
 0x14b   :  { %v99_v51 = vand.u32 15, %v73_v35 }
 0x14d   :  { %vm3389_vm5 = vcmp.ne.s32.totalorder %v99_v51, 15 }
 0x17a   :  { %v850_v32 = vpop.f32.mrb[8].mxu0 }
 0x17b   :  { %v852_v33 = vpop.f32.mrb[9].mxu0  ;;  %v902_v37 = vrot.slane %v850_v32, 1 }
 0x17c   :  { %v854_v36 = vpop.f32.mrb[10].mxu0  ;;  %v903_v41 = vrot.slane %v852_v33, 1 }
 0x17d   :  { %v904_v39 = vrot.slane %v854_v36, 1  ;;  %v856_v40 = vpop.f32.mrb[11].mxu0 }
 0x17e   :  { %v905_v42 = vrot.slane %v856_v40, 1 }
 0x17f   :  { %v915_v43 = vsel %vm910_vm3, %v902_v37, %v904_v39 }
 0x180   :  { %v3375_v38 = vadd.f32 %v915_v43, %v894_v25  ;;  %v916_v47 = vsel %vm910_vm3, %v903_v41, %v905_v42 }
 0x181   :  { %v3379_v50 = vadd.f32 %v916_v47, %v895_v30 }
 0x182   :  { %v860_v53 = vpop.f32.mrb[12].mxu0  ;;  %v953_v1 = vmul.f32 %v3375_v38, %v3375_v38 }
 0x183   :  { %v906_v57 = vrot.slane %v860_v53, 1  ;;  %v862_v59 = vpop.f32.mrb[13].mxu0  ;;  %v954_v8 = vmul.f32 %v3379_v50, %v3379_v50 }
 0x184   :  { %v907_v60 = vrot.slane %v862_v59, 1  ;;  %v864_v63 = vpop.f32.mrb[14].mxu0 }
 0x185   :  { %v913_v2 = vsel %vm910_vm3, %v904_v39, %v906_v57  ;;  %v908_v5 = vrot.slane %v864_v63, 1  ;;  %v866_v7 = vpop.f32.mrb[15].mxu0 }
 0x186   :  { %v921_v10 = vsel %vm3381_vm4, %v913_v2, 0.0  ;;  %v914_v11 = vsel %vm910_vm3, %v905_v42, %v907_v60  ;;  %v909_v14 = vrot.slane %v866_v7, 1 }
 0x187   :  { %v3400_v15 = vadd.f32 %v921_v10, %v3335_v45  ;;  %v922_v16 = vsel %vm3381_vm4, %v914_v11, 0.0  ;;  %v911_v19 = vsel %vm910_vm3, %v906_v57, %v908_v5  ;;  %v917_v20 = vsel %vm910_vm3, %v908_v5, %v902_v37 }
 0x188   :  { %v3409_v25 = vadd.f32 %v922_v16, %v3339_v48  ;;  %v925_v26 = vsel %vm3389_vm5, %v917_v20, 0.0  ;;  %v3413_v28 = vadd.f32 %v911_v19, %v898_v12  ;;  %v912_v45 = vsel %vm910_vm3, %v907_v60, %v909_v14 }
 0x189   :  { %v935_v30 = vadd.f32 %v3400_v15, %v3375_v38  ;;  %v955_v32 = vmul.f32 %v3400_v15, %v3400_v15  ;;  %v3421_v33 = vadd.f32 %v925_v26, %v900_v22  ;;  %v918_v48 = vsel %vm910_vm3, %v909_v14, %v903_v41 }
 0x18a   :  { %v944_v34 = vadd.f32 %v3409_v25, %v3379_v50  ;;  %v956_v12 = vmul.f32 %v3409_v25, %v3409_v25  ;;  %v957_v36 = vmul.f32 %v3413_v28, %v3413_v28  ;;  %v926_v37 = vsel %vm3389_vm5, %v918_v48, 0.0 }
 0x18b   :  { %v961_v39 = vadd.f32 %v955_v32, %v953_v1  ;;  %v936_v40 = vadd.f32 %v935_v30, %v3413_v28  ;;  %v3434_v22 = vadd.f32 %v912_v45, %v899_v21  ;;  %v959_v41 = vmul.f32 %v3421_v33, %v3421_v33 }
 0x18c   :  { %v970_v35 = vadd.f32 %v956_v12, %v954_v8  ;;  %v3438_v42 = vadd.f32 %v926_v37, %v901_v31 }
 0x18d   :  { %v937_v43 = vadd.f32 %v936_v40, %v3421_v33  ;;  %v962_v44 = vadd.f32 %v961_v39, %v957_v36  ;;  %v945_v47 = vadd.f32 %v944_v34, %v3434_v22  ;;  %v958_v51 = vmul.f32 %v3434_v22, %v3434_v22 }
 0x18e   :  { %v960_v53 = vmul.f32 %v3438_v42, %v3438_v42 }
 0x18f   :  { %v938_v57 = vrot.slane %v937_v43, 4  ;;  %v963_v21 = vadd.f32 %v962_v44, %v959_v41  ;;  %v946_v59 = vadd.f32 %v945_v47, %v3438_v42  ;;  %v971_v60 = vadd.f32 %v970_v35, %v958_v51  ;;  %v1125_v44 = vld [vmem:[%s3687_s4 + $0x18] sm:$0xff]  ;;  %v1122_v51 = vld [vmem:[%s3687_s4] sm:$0xff] }
 0x191   :  { %v939_v63 = vadd.f32 %v938_v57, %v937_v43  ;;  %v964_v1 = vrot.slane %v963_v21, 4  ;;  %v947_v31 = vrot.slane %v946_v59, 4  ;;  %v972_v2 = vadd.f32 %v971_v60, %v960_v53  ;;  %v1123_v43 = vld [vmem:[%s3687_s4 + $0x8] sm:$0xff]  ;;  %v1124_v53 = vld [vmem:[%s3687_s4 + $0x10] sm:$0xff] }
 0x192   :  { %v3455_v47 = vpack.c.bf16 %v1125_v44, %v1123_v43  ;;  %v3463_v57 = vpack.c.bf16 %v1124_v53, %v1122_v51  ;;  %v2838_v60 = vld [vmem:[#allocation5 + $0x8] ss:$24 sps:$4 sm:$0xff]  }
 0x193   :  { %v948_v5 = vadd.f32 %v947_v31, %v946_v59  ;;  %v973_v7 = vrot.slane %v972_v2, 4  ;;  %v940_v8 = vrot.slane %v939_v63, 2  ;;  %v965_v10 = vadd.f32 %v964_v1, %v963_v21  ;;  %v2837_v59 = vld [vmem:[#allocation5 + $0x4] ss:$24 sps:$4 sm:$0xff]   ;;  %v2844_v1 = vld [vmem:[#allocation5 + $0x38] ss:$24 sps:$4 sm:$0xff]  }
 0x194   :  { %2643 = vmatprep.subr.bf16.mxu1 %v3455_v47  ;;  %v3067_v21 = vmov 0.0   ;;  %v2846_v31 = vld [vmem:[#allocation5 + $0x3c] ss:$24 sps:$4 sm:$0xff]  }
 0x195   :  { %v949_v11 = vrot.slane %v948_v5, 2  ;;  %v974_v14 = vadd.f32 %v973_v7, %v972_v2  ;;  %v966_v16 = vrot.slane %v965_v10, 2  ;;  %v941_v19 = vadd.f32 %v940_v8, %v939_v63  ;;  %v2840_v63 = vld [vmem:[#allocation5 + $0xc] ss:$24 sps:$4 sm:$0xff]   ;;  %v2850_v2 = vld [vmem:[#allocation5 + $0x68] ss:$24 sps:$4 sm:$0xff]  }
 0x196   :  { %1874 = vmatprep.subr.bf16.mxu0 %v2840_v63  ;;  %v2856_v7 = vld [vmem:[#allocation5 + $0x98] ss:$24 sps:$4 sm:$0xff]   ;;  %v2858_v8 = vld [vmem:[#allocation5 + $0x9c] ss:$24 sps:$4 sm:$0xff]  }
 0x197   :  { %v950_v20 = vadd.f32 %v949_v11, %v948_v5  ;;  %v975_v26 = vrot.slane %v974_v14, 2  ;;  %v967_v45 = vadd.f32 %v966_v16, %v965_v10  ;;  %v942_v34 = vrot.slane %v941_v19, 1  ;;  %1875 = vmatpush1.bf16.msra.mxu0 %v2838_v60  ;;  %v2852_v5 = vld [vmem:[#allocation5 + $0x6c] ss:$24 sps:$4 sm:$0xff]   ;;  %v2862_v10 = vld [vmem:[#allocation5 + $0xc8] ss:$24 sps:$4 sm:$0xff]  }
 0x198   :  { %1876 = vmatprep.subr.bf16.mxu0 %v2846_v31  ;;  %v2864_v11 = vld [vmem:[#allocation5 + $0xcc] ss:$24 sps:$4 sm:$0xff]   ;;  %v2870_v16 = vld [vmem:[#allocation5 + $0xfc] ss:$24 sps:$4 sm:$0xff]   ;;  %v3068_v31 = vmov 1966171168  }
 0x199   :  { %v951_v30 = vrot.slane %v950_v20, 1  ;;  %v976_v32 = vadd.f32 %v975_v26, %v974_v14  ;;  %v968_v48 = vrot.slane %v967_v45, 1  ;;  %v943_v40 = vadd.f32 %v942_v34, %v941_v19  ;;  %v2868_v14 = vld [vmem:[#allocation5 + $0xf8] ss:$24 sps:$4 sm:$0xff]   ;;  %v2874_v19 = vld [vmem:[#allocation5 + $0x128] ss:$24 sps:$4 sm:$0xff]  }
 0x19a   :  { %v2880_v26 = vld [vmem:[#allocation5 + $0x158] ss:$24 sps:$4 sm:$0xff]   ;;  %v2894_v34 = vld [vmem:[#allocation5 + $0x1bc] ss:$24 sps:$4 sm:$0xff]  }
 0x19b   :  { %v977_v12 = vrot.slane %v976_v32, 1  ;;  %v969_v36 = vadd.f32 %v968_v48, %v967_v45  ;;  %v952_v37 = vadd.f32 %v951_v30, %v950_v20  ;;  %1877 = vmatpush1.bf16.msra.mxu0 %v2844_v1  ;;  %v2876_v20 = vld [vmem:[#allocation5 + $0x12c] ss:$24 sps:$4 sm:$0xff]   ;;  %v2882_v45 = vld [vmem:[#allocation5 + $0x15c] ss:$24 sps:$4 sm:$0xff]  }
 0x19c   :  { %1878 = vmatprep.subr.bf16.mxu0 %v2852_v5  ;;  %v2886_v30 = vld [vmem:[#allocation5 + $0x188] ss:$24 sps:$4 sm:$0xff]   ;;  %v2892_v48 = vld [vmem:[#allocation5 + $0x1b8] ss:$24 sps:$4 sm:$0xff]  }
 0x19d   :  { %v978_v39 = vadd.f32 %v977_v12, %v976_v32  ;;  %v980_v41 = vsel %vm979_vm6, %v943_v40, %v969_v36  ;;  %v2888_v32 = vld [vmem:[#allocation5 + $0x18c] ss:$24 sps:$4 sm:$0xff]   ;;  %v2898_v12 = vld [vmem:[#allocation5 + $0x1e8] ss:$24 sps:$4 sm:$0xff]  }
 0x19e   :  { %v2900_v36 = vld [vmem:[#allocation5 + $0x1ec] ss:$24 sps:$4 sm:$0xff]   ;;  %v2910_v40 = vld [vmem:[#allocation5 + $0x248] ss:$24 sps:$4 sm:$0xff]  }
 0x19f   :  { %v981_v35 = vsel %vm979_vm6, %v952_v37, %v978_v39  ;;  %1879 = vmatpush1.bf16.msra.mxu0 %v2850_v2  ;;  %v2904_v37 = vld [vmem:[#allocation5 + $0x218] ss:$24 sps:$4 sm:$0xff]   ;;  %v2906_v39 = vld [vmem:[#allocation5 + $0x21c] ss:$24 sps:$4 sm:$0xff]   ;;  %v1096_v2 = vunpack.c.l.s4 %v3068_v31 }
 0x1a0   :  { %1078 = vmatprep.mubr.f32.mxu1 %v981_v35  ;;  %1880 = vmatprep.subr.bf16.mxu0 %v2858_v8  ;;  %v2912_v35 = vld [vmem:[#allocation5 + $0x24c] ss:$24 sps:$4 sm:$0xff]   ;;  %v2883_v31 = vld [vmem:[#allocation5 + $0x180] ss:$24 sps:$4 sm:$0xff]  }
 0x1a1   :  { %1079 = vmatmul.mubr.f32.vlgmr.msra.gmra.mrb[8].mxu1 %v980_v41  ;;  %v1097_v5 = vunpack.c.0.s8 %v1096_v2  ;;  %v2891_v2 = vld [vmem:[#allocation5 + $0x1b4] ss:$24 sps:$4 sm:$0xff]  }
 0x1a2   :  { %2645 = vmatpush1.bf16.msra.mxu1 %v3463_v57  ;;  %1194 = vmatprep.mubr.f32.mxu1 %v3067_v21 }
 0x1a3   :  { %1821 = vmatprep.subr.bf16.mxu1 %v2837_v59  ;;  %1881 = vmatpush1.bf16.msra.mxu0 %v2856_v7  ;;  %v3469_v7 = vsub.s32 %v1097_v5, %v3329_v29  ;;  %v2889_v5 = vld [vmem:[#allocation5 + $0x1b0] ss:$24 sps:$4 sm:$0xff]  }
 0x1a4   :  { %1882 = vmatprep.subr.bf16.mxu0 %v2864_v11 }
 0x1a7   :  { %1883 = vmatpush1.bf16.msra.mxu0 %v2862_v10 }
 0x1a8   :  { %1884 = vmatprep.subr.bf16.mxu0 %v2870_v16 }
 0x1ab   :  { %1885 = vmatpush1.bf16.msra.mxu0 %v2868_v14  ;;  %v1091_v14 = vld [vmem:[%s3688_s5] sm:$0x1] }
 0x1ac   :  { %1886 = vmatprep.subr.bf16.mxu0 %v2876_v20  ;;  %v1112_v20 = vld [vmem:[%s3689_s6] sm:$0x1] }
 0x1af   :  { %1887 = vmatpush1.bf16.msra.mxu0 %v2874_v19 }
 0x1b0   :  { %1888 = vmatprep.subr.bf16.mxu0 %v2882_v45  ;;  %v3480_v45 = vsub.s32 0, %v3329_v29 }
 0x1b3   :  { %1889 = vmatpush1.bf16.msra.mxu0 %v2880_v26 }
 0x1b4   :  { %1890 = vmatprep.subr.bf16.mxu0 %v2888_v32 }
 0x1b7   :  { %1891 = vmatpush1.bf16.msra.mxu0 %v2886_v30 }
 0x1b8   :  { %1892 = vmatprep.subr.bf16.mxu0 %v2894_v34  ;;  %v2843_v34 = vld [vmem:[#allocation5 + $0x34] ss:$24 sps:$4 sm:$0xff]  }
 0x1bb   :  { %1893 = vmatpush1.bf16.msra.mxu0 %v2892_v48  ;;  %v2835_v48 = vld [vmem:[#allocation5] ss:$24 sps:$4 sm:$0xff]  }
 0x1bc   :  { %1894 = vmatprep.subr.bf16.mxu0 %v2900_v36  ;;  %v2841_v36 = vld [vmem:[#allocation5 + $0x30] ss:$24 sps:$4 sm:$0xff]  }
 0x1bf   :  { %1895 = vmatpush1.bf16.msra.mxu0 %v2898_v12 }
 0x1c0   :  { %1896 = vmatprep.subr.bf16.mxu0 %v2906_v39  ;;  %v2847_v39 = vld [vmem:[#allocation5 + $0x60] ss:$24 sps:$4 sm:$0xff]  }
 0x1c3   :  { %1897 = vmatpush1.bf16.msra.mxu0 %v2904_v37  ;;  %v2849_v37 = vld [vmem:[#allocation5 + $0x64] ss:$24 sps:$4 sm:$0xff]  }
 0x1c4   :  { %1898 = vmatprep.subr.bf16.mxu0 %v2912_v35  ;;  %v2853_v35 = vld [vmem:[#allocation5 + $0x90] ss:$24 sps:$4 sm:$0xff]  }
 0x1c7   :  { %1899 = vmatpush1.bf16.msra.mxu0 %v2910_v40  ;;  %v2855_v40 = vld [vmem:[#allocation5 + $0x94] ss:$24 sps:$4 sm:$0xff]  }
 0x274   :  { %v2572_v41 = vpop.f32.mrb[8].mxu1 }
 0x275   :  { %v2573_v43 = vpop.f32.mrb[9].mxu1 }
 0x276   :  { %v2574_v44 = vadd.f32 %v2573_v43, %v2572_v41  ;;  %v2861_v41 = vld [vmem:[#allocation5 + $0xc4] ss:$24 sps:$4 sm:$0xff]   ;;  %v2859_v43 = vld [vmem:[#allocation5 + $0xc0] ss:$24 sps:$4 sm:$0xff]  }
 0x278   :  { %v1084_v51 = vmul.f32 0.001953125, %v2574_v44  ;;  %v2867_v44 = vld [vmem:[#allocation5 + $0xf4] ss:$24 sps:$4 sm:$0xff]  }
 0x27a   :  { %v1085_v53 = vmul.f32 %v1084_v51, %v1084_v51 }
 0x27c   :  { %v1087_v59 = vrot.slane %v1085_v53, 7  ;;  %v2873_v53 = vld [vmem:[#allocation5 + $0x124] ss:$24 sps:$4 sm:$0xff]  }
 0x27e   :  { %v1089_v60 = vsub.f32 %v1084_v51, %v1087_v59  ;;  %v2871_v59 = vld [vmem:[#allocation5 + $0x120] ss:$24 sps:$4 sm:$0xff]  }
 0x280   :  { %v1090_v63 = vmax.f32 %v1089_v60, 0.0  ;;  %v2879_v60 = vld [vmem:[#allocation5 + $0x154] ss:$24 sps:$4 sm:$0xff]  }
 0x282   :  { %v1092_v1 = vadd.f32 1e-05, %v1090_v63  ;;  %v2877_v63 = vld [vmem:[#allocation5 + $0x150] ss:$24 sps:$4 sm:$0xff]  }
 0x284   :  { %2979 = vrsqrt.f32 %v1092_v1  ;;  %v2885_v1 = vld [vmem:[#allocation5 + $0x184] ss:$24 sps:$4 sm:$0xff]  }
 0x28e   :  { %v2980_v8 = vpop.eup %2979 }
 0x28f   :  { %v1101_v10 = vrot.slane %v2980_v8, %v3469_v7  ;;  %v2897_v8 = vld [vmem:[#allocation5 + $0x1e4] ss:$24 sps:$4 sm:$0xff]  }
 0x291   :  { %v1102_v11 = vcombine.high %v1101_v10, %v1101_v10  ;;  %v2895_v10 = vld [vmem:[#allocation5 + $0x1e0] ss:$24 sps:$4 sm:$0xff]  }
 0x293   :  { %v1109_v16 = vrot.slane %v1102_v11, %v3469_v7  ;;  %v2903_v11 = vld [vmem:[#allocation5 + $0x214] ss:$24 sps:$4 sm:$0xff]  }
 0x295   :  { %v1111_v19 = vmul.f32 %v1109_v16, %v1091_v14  ;;  %v2901_v14 = vld [vmem:[#allocation5 + $0x210] ss:$24 sps:$4 sm:$0xff]   ;;  %v2909_v16 = vld [vmem:[#allocation5 + $0x244] ss:$24 sps:$4 sm:$0xff]  }
 0x297   :  { %v1113_v26 = vmul.f32 %v1111_v19, %v1084_v51  ;;  %v2865_v51 = vld [vmem:[#allocation5 + $0xf0] ss:$24 sps:$4 sm:$0xff]  }
 0x299   :  { %v1114_v30 = vsub.f32 %v1112_v20, %v1113_v26  ;;  %v2915_v20 = vld [vmem:[#allocation5 + $0x274] ss:$24 sps:$4 sm:$0xff]   ;;  %v2913_v26 = vld [vmem:[#allocation5 + $0x270] ss:$24 sps:$4 sm:$0xff]  }
 0x29b   :  { %v1119_v32 = vrot.slane %v1114_v30, %v3480_v45  ;;  %v2918_v30 = vld [vmem:[#allocation5 + $0x27c] ss:$24 sps:$4 sm:$0xff]  }
 0x29c   :  { %1900 = vmatprep.subr.bf16.mxu0 %v2918_v30 }
 0x29d   :  { %v1121_v12 = vsel %vm979_vm6, %v1111_v19, %v1119_v32  ;;  %v2907_v19 = vld [vmem:[#allocation5 + $0x240] ss:$24 sps:$4 sm:$0xff]  }
 0x29e   :  { %2442 = vmatmul.mubr.msk.f32.vlgmr.msra.gmra.mrb[10].mxu1 %vm1126_vm7, %v1121_v12  ;;  %v2916_v32 = vld [vmem:[#allocation5 + $0x278] ss:$24 sps:$4 sm:$0xff]   ;;  %v2924_v12 = vld [vmem:[#allocation5 + $0x2ac] ss:$24 sps:$4 sm:$0xff]  }
 0x29f   :  { %1822 = vmatpush1.bf16.msra.mxu1 %v2835_v48  ;;  %1901 = vmatpush1.bf16.msra.mxu0 %v2916_v32  ;;  %v2921_v48 = vld [vmem:[#allocation5 + $0x2a4] ss:$24 sps:$4 sm:$0xff]  }
 0x2a0   :  { %1823 = vmatprep.subr.bf16.mxu1 %v2843_v34  ;;  %v2919_v34 = vld [vmem:[#allocation5 + $0x2a0] ss:$24 sps:$4 sm:$0xff]   ;;  %1902 = vmatprep.subr.bf16.mxu0 %v2924_v12 }
 0x2a3   :  { %1824 = vmatpush1.bf16.msra.mxu1 %v2841_v36  ;;  %v2922_v36 = vld [vmem:[#allocation5 + $0x2a8] ss:$24 sps:$4 sm:$0xff]  }
 0x2a4   :  { %1825 = vmatprep.subr.bf16.mxu1 %v2849_v37  ;;  %v2927_v37 = vld [vmem:[#allocation5 + $0x2d4] ss:$24 sps:$4 sm:$0xff]   ;;  %1903 = vmatpush1.bf16.msra.mxu0 %v2922_v36 }
 0x2a7   :  { %1826 = vmatpush1.bf16.msra.mxu1 %v2847_v39  ;;  %v2925_v39 = vld [vmem:[#allocation5 + $0x2d0] ss:$24 sps:$4 sm:$0xff]  }
 0x2a8   :  { %1827 = vmatprep.subr.bf16.mxu1 %v2855_v40  ;;  %v2930_v40 = vld [vmem:[#allocation5 + $0x2dc] ss:$24 sps:$4 sm:$0xff]  }
 0x2a9   :  { %1904 = vmatprep.subr.bf16.mxu0 %v2930_v40 }
 0x2ab   :  { %1828 = vmatpush1.bf16.msra.mxu1 %v2853_v35  ;;  %v2928_v35 = vld [vmem:[#allocation5 + $0x2d8] ss:$24 sps:$4 sm:$0xff]  }
 0x2ac   :  { %1829 = vmatprep.subr.bf16.mxu1 %v2861_v41  ;;  %1905 = vmatpush1.bf16.msra.mxu0 %v2928_v35  ;;  %v2933_v41 = vld [vmem:[#allocation5 + $0x14] ss:$24 sps:$4 sm:$0xff]  }
 0x2ad   :  { %2647 = vmatprep.subr.bf16.mxu0 %v3191_v46 }
 0x2af   :  { %1830 = vmatpush1.bf16.msra.mxu1 %v2859_v43  ;;  %v3487_v43 = vsub.s32 1, %v3329_v29 }
 0x2b0   :  { %1831 = vmatprep.subr.bf16.mxu1 %v2867_v44 }
 0x2b3   :  { %1832 = vmatpush1.bf16.msra.mxu1 %v2865_v51 }
 0x2b4   :  { %1833 = vmatprep.subr.bf16.mxu1 %v2873_v53 }
 0x2b7   :  { %1834 = vmatpush1.bf16.msra.mxu1 %v2871_v59 }
 0x2b8   :  { %1835 = vmatprep.subr.bf16.mxu1 %v2879_v60 }
 0x2bb   :  { %1836 = vmatpush1.bf16.msra.mxu1 %v2877_v63 }
 0x2bc   :  { %1837 = vmatprep.subr.bf16.mxu1 %v2885_v1 }
 0x2bf   :  { %1838 = vmatpush1.bf16.msra.mxu1 %v2883_v31 }
 0x2c0   :  { %1839 = vmatprep.subr.bf16.mxu1 %v2891_v2 }
 0x2c3   :  { %1840 = vmatpush1.bf16.msra.mxu1 %v2889_v5 }
 0x2c4   :  { %1841 = vmatprep.subr.bf16.mxu1 %v2897_v8 }
 0x2c7   :  { %1842 = vmatpush1.bf16.msra.mxu1 %v2895_v10 }
 0x2c8   :  { %1843 = vmatprep.subr.bf16.mxu1 %v2903_v11 }
 0x2cb   :  { %1844 = vmatpush1.bf16.msra.mxu1 %v2901_v14 }
 0x2cc   :  { %1845 = vmatprep.subr.bf16.mxu1 %v2909_v16 }
 0x2cf   :  { %1846 = vmatpush1.bf16.msra.mxu1 %v2907_v19 }
 0x2d0   :  { %1847 = vmatprep.subr.bf16.mxu1 %v2915_v20 }
 0x2d3   :  { %1848 = vmatpush1.bf16.msra.mxu1 %v2913_v26 }
 0x2d4   :  { %1849 = vmatprep.subr.bf16.mxu1 %v2921_v48 }
 0x2d7   :  { %1850 = vmatpush1.bf16.msra.mxu1 %v2919_v34 }
 0x2d8   :  { %1851 = vmatprep.subr.bf16.mxu1 %v2927_v37 }
 0x2db   :  { %1852 = vmatpush1.bf16.msra.mxu1 %v2925_v39 }
 0x2dc   :  { %1927 = vmatprep.subr.bf16.mxu1 %v2933_v41  ;;  %v2937_v41 = vld [vmem:[#allocation5 + $0x70] ss:$24 sps:$4 sm:$0xff]  }
 0x371   :  { %v1196_v44 = vpop.f32.mrb[10].mxu1 }
 0x372   :  { %v1204_v51 = vrot.slane %v1196_v44, %v3480_v45  ;;  %v1198_v53 = vpop.f32.mrb[11].mxu1  ;;  %v1220_v1 = vrot.slane %v1196_v44, %v3487_v43 }
 0x373   :  { %v1208_v59 = vrot.slane %v1198_v53, %v3480_v45  ;;  %v1224_v31 = vrot.slane %v1198_v53, %v3487_v43  ;;  %v2940_v53 = vld [vmem:[#allocation5 + $0xa0] ss:$24 sps:$4 sm:$0xff]  }
 0x374   :  { %v1209_v60 = vmul.f32 %v1204_v51, %v3375_v38  ;;  %v1211_v63 = vmul.f32 %v1204_v51, %v3400_v15  ;;  %v1213_v26 = vmul.f32 %v1204_v51, %v3413_v28  ;;  %v1215_v30 = vmul.f32 %v1204_v51, %v3421_v33  ;;  %v2934_v28 = vld [vmem:[#allocation5 + $0x40] ss:$24 sps:$4 sm:$0xff]   ;;  %v2939_v33 = vld [vmem:[#allocation5 + $0x74] ss:$24 sps:$4 sm:$0xff]   ;;  %v2942_v51 = vld [vmem:[#allocation5 + $0xa4] ss:$24 sps:$4 sm:$0xff]  }
 0x375   :  { %v1210_v46 = vmul.f32 %v1208_v59, %v3379_v50  ;;  %v1212_v2 = vmul.f32 %v1208_v59, %v3409_v25  ;;  %v1214_v5 = vmul.f32 %v1208_v59, %v3434_v22  ;;  %v1216_v8 = vmul.f32 %v1208_v59, %v3438_v42  ;;  %v2931_v22 = vld [vmem:[#allocation5 + $0x10] ss:$24 sps:$4 sm:$0xff]   ;;  %v2936_v42 = vld [vmem:[#allocation5 + $0x44] ss:$24 sps:$4 sm:$0xff]   ;;  %v2945_v59 = vld [vmem:[#allocation5 + $0xd4] ss:$24 sps:$4 sm:$0xff]  }
 0x376   :  { %v1225_v10 = vadd.f32 %v1220_v1, %v1209_v60  ;;  %v1227_v11 = vadd.f32 %v1220_v1, %v1211_v63  ;;  %v1229_v36 = vadd.f32 %v1220_v1, %v1213_v26  ;;  %v1231_v37 = vadd.f32 %v1220_v1, %v1215_v30  ;;  %v2951_v60 = vld [vmem:[#allocation5 + $0x134] ss:$24 sps:$4 sm:$0xff]   ;;  %v2966_v63 = vld [vmem:[#allocation5 + $0x224] ss:$24 sps:$4 sm:$0xff]   ;;  %v2967_v1 = vld [vmem:[#allocation5 + $0x250] ss:$24 sps:$4 sm:$0xff]  }
 0x377   :  { %v1226_v14 = vadd.f32 %v1224_v31, %v1210_v46  ;;  %v1228_v16 = vadd.f32 %v1224_v31, %v1212_v2  ;;  %v1230_v19 = vadd.f32 %v1224_v31, %v1214_v5  ;;  %v1232_v38 = vadd.f32 %v1224_v31, %v1216_v8  ;;  %v2972_v31 = vld [vmem:[#allocation5 + $0x284] ss:$24 sps:$4 sm:$0xff]   ;;  %v2973_v46 = vld [vmem:[#allocation5 + $0x2b0] ss:$24 sps:$4 sm:$0xff]   ;;  %v2976_v5 = vld [vmem:[#allocation5 + $0x2e0] ss:$24 sps:$4 sm:$0xff]  }
 0x378   :  { %v1233_v20 = vmax.f32 %v1225_v10, 0.0  ;;  %v1235_v15 = vmax.f32 %v1227_v11, 0.0  ;;  %v1237_v40 = vmax.f32 %v1229_v36, 0.0  ;;  %v1239_v35 = vmax.f32 %v1231_v37, 0.0  ;;  %v2978_v2 = vld [vmem:[#allocation5 + $0x2e4] ss:$24 sps:$4 sm:$0xff]  }
 0x379   :  { %v1234_v32 = vmax.f32 %v1226_v14, 0.0  ;;  %v1236_v50 = vmax.f32 %v1228_v16, 0.0  ;;  %v1238_v48 = vmax.f32 %v1230_v19, 0.0  ;;  %v1240_v25 = vmax.f32 %v1232_v38, 0.0 }
 0x37a   :  { %v3501_v12 = vpack.c.bf16 %v1235_v15, %v1233_v20  ;;  %v3511_v44 = vpack.c.bf16 %v1239_v35, %v1237_v40 }
 0x37b   :  { %v1242_v34 = vpack.c.bf16 %v1236_v50, %v1234_v32  ;;  %v3503_v39 = vpack.c.bf16 %v1240_v25, %v1238_v48 }
 0x37d   :  { %1853 = vmatprep.mubr.bf16.mxu1 %v1242_v34  ;;  %1906 = vmatprep.mubr.bf16.mxu0 %v1242_v34 }
 0x37e   :  { %1854 = vmatmul.mubr.bf16.vlgmr.msra.gmra.mrb[12].mxu1 %v3501_v12  ;;  %1907 = vmatmul.mubr.bf16.vlgmr.msra.gmra.mrb[16].mxu0 %v3501_v12 }
 0x37f   :  { %1928 = vmatpush1.bf16.msra.mxu1 %v2931_v22  ;;  %1863 = vmatprep.mubr.bf16.mxu1 %v3503_v39 }
 0x380   :  { %1916 = vmatprep.mubr.bf16.mxu0 %v3503_v39  ;;  %1929 = vmatprep.subr.bf16.mxu1 %v2936_v42 }
 0x381   :  { %2649 = vmatpush3.bf16.msra.mxu0 %v3199_v49  ;;  %v2943_v49 = vld [vmem:[#allocation5 + $0xd0] ss:$24 sps:$4 sm:$0xff]  }
 0x382   :  { %2651 = vmatprep.subr.bf16.mxu0 %v3209_v52  ;;  %v2948_v52 = vld [vmem:[#allocation5 + $0x104] ss:$24 sps:$4 sm:$0xff]  }
 0x383   :  { %1930 = vmatpush1.bf16.msra.mxu1 %v2934_v28 }
 0x384   :  { %1931 = vmatprep.subr.bf16.mxu1 %v2939_v33 }
 0x385   :  { %2653 = vmatpush3.bf16.msra.mxu0 %v3218_v55  ;;  %v2946_v55 = vld [vmem:[#allocation5 + $0x100] ss:$24 sps:$4 sm:$0xff]  }
 0x386   :  { %1864 = vmatmul.mubr.bf16.gmra.mrb[16].mxu1 %v3511_v44  ;;  %1917 = vmatmul.mubr.bf16.gmra.mrb[20].mxu0 %v3511_v44 }
 0x387   :  { %1932 = vmatpush1.bf16.msra.mxu1 %v2937_v41  ;;  %1959 = vmatprep.mubr.bf16.mxu1 %v1242_v34 }
 0x388   :  { %1933 = vmatprep.subr.bf16.mxu1 %v2942_v51  ;;  %2655 = vmatprep.subr.bf16.mxu0 %v3227_v58  ;;  %v2949_v58 = vld [vmem:[#allocation5 + $0x130] ss:$24 sps:$4 sm:$0xff]  }
 0x389   :  { %2657 = vmatpush3.bf16.msra.mxu0 %v3235_v61  ;;  %v2954_v61 = vld [vmem:[#allocation5 + $0x164] ss:$24 sps:$4 sm:$0xff]  }
 0x38a   :  { %2659 = vmatprep.subr.bf16.mxu0 %v3245_v0  ;;  %v2952_v0 = vld [vmem:[#allocation5 + $0x160] ss:$24 sps:$4 sm:$0xff]  }
 0x38b   :  { %1934 = vmatpush1.bf16.msra.mxu1 %v2940_v53 }
 0x38c   :  { %1935 = vmatprep.subr.bf16.mxu1 %v2945_v59 }
 0x38d   :  { %2661 = vmatpush3.bf16.msra.mxu0 %v3253_v3  ;;  %v2957_v3 = vld [vmem:[#allocation5 + $0x194] ss:$24 sps:$4 sm:$0xff]  }
 0x38e   :  { %2663 = vmatprep.subr.bf16.mxu0 %v3263_v6  ;;  %v2955_v6 = vld [vmem:[#allocation5 + $0x190] ss:$24 sps:$4 sm:$0xff]  }
 0x38f   :  { %1936 = vmatpush1.bf16.msra.mxu1 %v2943_v49 }
 0x390   :  { %1937 = vmatprep.subr.bf16.mxu1 %v2948_v52 }
 0x391   :  { %2665 = vmatpush3.bf16.msra.mxu0 %v3271_v9  ;;  %v2960_v9 = vld [vmem:[#allocation5 + $0x1c4] ss:$24 sps:$4 sm:$0xff]  }
 0x392   :  { %2667 = vmatprep.subr.bf16.mxu0 %v3283_v13  ;;  %v2958_v13 = vld [vmem:[#allocation5 + $0x1c0] ss:$24 sps:$4 sm:$0xff]  }
 0x393   :  { %1938 = vmatpush1.bf16.msra.mxu1 %v2946_v55 }
 0x394   :  { %1939 = vmatprep.subr.bf16.mxu1 %v2951_v60 }
 0x395   :  { %2669 = vmatpush3.bf16.msra.mxu0 %v3295_v17  ;;  %v2963_v17 = vld [vmem:[#allocation5 + $0x1f4] ss:$24 sps:$4 sm:$0xff]  }
 0x396   :  { %2671 = vmatprep.subr.bf16.mxu0 %v3298_v18  ;;  %v2961_v18 = vld [vmem:[#allocation5 + $0x1f0] ss:$24 sps:$4 sm:$0xff]  }
 0x397   :  { %1940 = vmatpush1.bf16.msra.mxu1 %v2949_v58 }
 0x398   :  { %1941 = vmatprep.subr.bf16.mxu1 %v2954_v61 }
 0x399   :  { %2673 = vmatpush3.bf16.msra.mxu0 %v3313_v23  ;;  %v2964_v23 = vld [vmem:[#allocation5 + $0x220] ss:$24 sps:$4 sm:$0xff]  }
 0x39a   :  { %2675 = vmatprep.subr.bf16.mxu0 %v3316_v24  ;;  %v2969_v24 = vld [vmem:[#allocation5 + $0x254] ss:$24 sps:$4 sm:$0xff]  }
 0x39b   :  { %1942 = vmatpush1.bf16.msra.mxu1 %v2952_v0 }
 0x39c   :  { %1943 = vmatprep.subr.bf16.mxu1 %v2957_v3 }
 0x39d   :  { %2677 = vmatpush3.bf16.msra.mxu0 %v3325_v27  ;;  %v2970_v27 = vld [vmem:[#allocation5 + $0x280] ss:$24 sps:$4 sm:$0xff]  }
 0x39e   :  { %2679 = vmatprep.subr.bf16.mxu0 %v3455_v47  ;;  %v2975_v47 = vld [vmem:[#allocation5 + $0x2b4] ss:$24 sps:$4 sm:$0xff]  }
 0x39f   :  { %1944 = vmatpush1.bf16.msra.mxu1 %v2955_v6 }
 0x3a0   :  { %1945 = vmatprep.subr.bf16.mxu1 %v2960_v9 }
 0x3a3   :  { %1946 = vmatpush1.bf16.msra.mxu1 %v2958_v13 }
 0x3a4   :  { %1947 = vmatprep.subr.bf16.mxu1 %v2963_v17 }
 0x3a7   :  { %1948 = vmatpush1.bf16.msra.mxu1 %v2961_v18 }
 0x3a8   :  { %1949 = vmatprep.subr.bf16.mxu1 %v2966_v63 }
 0x3ab   :  { %1950 = vmatpush1.bf16.msra.mxu1 %v2964_v23 }
 0x3ac   :  { %1951 = vmatprep.subr.bf16.mxu1 %v2969_v24 }
 0x3af   :  { %1952 = vmatpush1.bf16.msra.mxu1 %v2967_v1 }
 0x3b0   :  { %1953 = vmatprep.subr.bf16.mxu1 %v2972_v31 }
 0x3b3   :  { %1954 = vmatpush1.bf16.msra.mxu1 %v2970_v27 }
 0x3b4   :  { %1955 = vmatprep.subr.bf16.mxu1 %v2975_v47 }
 0x3b7   :  { %1956 = vmatpush1.bf16.msra.mxu1 %v2973_v46 }
 0x3b8   :  { %1957 = vmatprep.subr.bf16.mxu1 %v2978_v2 }
 0x3bb   :  { %1958 = vmatpush1.bf16.msra.mxu1 %v2976_v5 }
 0x3be   :  { %1960 = vmatmul.mubr.bf16.vlgmr.msra.gmra.mrb[20].mxu1 %v3501_v12 }
 0x3bf   :  { %1969 = vmatprep.mubr.bf16.mxu1 %v3503_v39 }
 0x3c6   :  { %1970 = vmatmul.mubr.bf16.gmra.mrb[24].mxu1 %v3511_v44 }
 0x451   :  { %v1855_v8 = vpop.f32.mrb[12].mxu1  ;;  %v1908_v10 = vpop.f32.mrb[16].mxu0 }
 0x452   :  { %v1857_v11 = vpop.f32.mrb[13].mxu1  ;;  %v1910_v14 = vpop.f32.mrb[17].mxu0  ;;  %v1980_v38 = vrot.slane %v1855_v8, 7 }
 0x453   :  { %v1859_v16 = vpop.f32.mrb[14].mxu1  ;;  %v1912_v19 = vpop.f32.mrb[18].mxu0  ;;  %v1981_v30 = vrot.slane %v1857_v11, 7 }
 0x454   :  { %v1982_v20 = vrot.slane %v1859_v16, 7  ;;  %v1861_v15 = vpop.f32.mrb[15].mxu1  ;;  %v1914_v26 = vpop.f32.mrb[19].mxu0 }
 0x455   :  { %v1983_v32 = vrot.slane %v1861_v15, 7 }
 0x456   :  { %v1992_v50 = vsel %vm877_vm0, %v1980_v38, %v1982_v20 }
 0x457   :  { %v2006_v48 = vadd.f32 %v1992_v50, %v1912_v19  ;;  %v1993_v25 = vsel %vm877_vm0, %v1981_v30, %v1983_v32 }
 0x458   :  { %v2007_v34 = vadd.f32 %v1993_v25, %v1914_v26 }
 0x459   :  { %v1865_v22 = vpop.f32.mrb[16].mxu1  ;;  %v1918_v12 = vpop.f32.mrb[20].mxu0 }
 0x45a   :  { %v1984_v42 = vrot.slane %v1865_v22, 7  ;;  %v1867_v36 = vpop.f32.mrb[17].mxu1  ;;  %v1920_v37 = vpop.f32.mrb[21].mxu0 }
 0x45b   :  { %v1985_v39 = vrot.slane %v1867_v36, 7  ;;  %v1869_v28 = vpop.f32.mrb[18].mxu1  ;;  %v1922_v33 = vpop.f32.mrb[22].mxu0 }
 0x45c   :  { %v1990_v40 = vsel %vm877_vm0, %v1982_v20, %v1984_v42  ;;  %v1986_v35 = vrot.slane %v1869_v28, 7  ;;  %v1871_v41 = vpop.f32.mrb[19].mxu1  ;;  %v1924_v44 = vpop.f32.mrb[23].mxu0 }
 0x45d   :  { %v2000_v51 = vsel %vm3342_vm1, %v1990_v40, 0.0  ;;  %v1991_v53 = vsel %vm877_vm0, %v1983_v32, %v1985_v39  ;;  %v1987_v59 = vrot.slane %v1871_v41, 7 }
 0x45e   :  { %v2008_v49 = vadd.f32 %v2000_v51, %v1918_v12  ;;  %v2001_v52 = vsel %vm3342_vm1, %v1991_v53, 0.0  ;;  %v1994_v55 = vsel %vm877_vm0, %v1986_v35, %v1980_v38  ;;  %v1988_v60 = vsel %vm877_vm0, %v1984_v42, %v1986_v35 }
 0x45f   :  { %v2009_v58 = vadd.f32 %v2001_v52, %v1920_v37  ;;  %v1996_v61 = vsel %vm3346_vm2, %v1994_v55, 0.0  ;;  %v2010_v0 = vadd.f32 %v1988_v60, %v1922_v33  ;;  %v1995_v3 = vsel %vm877_vm0, %v1987_v59, %v1981_v30 }
 0x460   :  { %v2004_v6 = vadd.f32 %v1996_v61, %v1908_v10  ;;  %v1997_v9 = vsel %vm3346_vm2, %v1995_v3, 0.0  ;;  %v1989_v56 = vsel %vm877_vm0, %v1985_v39, %v1987_v59 }
 0x461   :  { %v2005_v13 = vadd.f32 %v1997_v9, %v1910_v14  ;;  %v2011_v17 = vadd.f32 %v1989_v56, %v1924_v44 }
 0x491   :  { %v1961_v18 = vpop.f32.mrb[20].mxu1 }
 0x492   :  { %v1963_v63 = vpop.f32.mrb[21].mxu1  ;;  %v2012_v24 = vrot.slane %v1961_v18, 1 }
 0x493   :  { %v1965_v23 = vpop.f32.mrb[22].mxu1  ;;  %v2013_v27 = vrot.slane %v1963_v63, 1 }
 0x494   :  { %v2014_v1 = vrot.slane %v1965_v23, 1  ;;  %v1967_v31 = vpop.f32.mrb[23].mxu1 }
 0x495   :  { %v2015_v47 = vrot.slane %v1967_v31, 1 }
 0x496   :  { %v2024_v46 = vsel %vm910_vm3, %v2012_v24, %v2014_v1 }
 0x497   :  { %v3558_v2 = vadd.f32 %v2024_v46, %v2004_v6  ;;  %v2025_v62 = vsel %vm910_vm3, %v2013_v27, %v2015_v47 }
 0x498   :  { %v3562_v5 = vadd.f32 %v2025_v62, %v2005_v13 }
 0x499   :  { %v1971_v8 = vpop.f32.mrb[24].mxu1  ;;  %v2062_v19 = vmul.f32 %v3558_v2, %v3558_v2 }
 0x49a   :  { %v2016_v10 = vrot.slane %v1971_v8, 1  ;;  %v1973_v11 = vpop.f32.mrb[25].mxu1  ;;  %v2063_v26 = vmul.f32 %v3562_v5, %v3562_v5 }
 0x49b   :  { %v2017_v14 = vrot.slane %v1973_v11, 1  ;;  %v1975_v16 = vpop.f32.mrb[26].mxu1 }
 0x49c   :  { %v2022_v38 = vsel %vm910_vm3, %v2014_v1, %v2016_v10  ;;  %v2018_v20 = vrot.slane %v1975_v16, 1  ;;  %v1977_v15 = vpop.f32.mrb[27].mxu1 }
 0x49d   :  { %v2030_v30 = vsel %vm3381_vm4, %v2022_v38, 0.0  ;;  %v2023_v32 = vsel %vm910_vm3, %v2015_v47, %v2017_v14  ;;  %v2019_v50 = vrot.slane %v1977_v15, 1 }
 0x49e   :  { %v3574_v25 = vadd.f32 %v2030_v30, %v2006_v48  ;;  %v2031_v22 = vsel %vm3381_vm4, %v2023_v32, 0.0  ;;  %v2020_v12 = vsel %vm910_vm3, %v2016_v10, %v2018_v20  ;;  %v2026_v42 = vsel %vm910_vm3, %v2018_v20, %v2012_v24 }
 0x49f   :  { %v3582_v36 = vadd.f32 %v2031_v22, %v2007_v34  ;;  %v2034_v37 = vsel %vm3389_vm5, %v2026_v42, 0.0  ;;  %v3586_v39 = vadd.f32 %v2020_v12, %v2008_v49  ;;  %v2021_v48 = vsel %vm910_vm3, %v2017_v14, %v2019_v50 }
 0x4a0   :  { %v2044_v54 = vadd.f32 %v3574_v25, %v3558_v2  ;;  %v2064_v28 = vmul.f32 %v3574_v25, %v3574_v25  ;;  %v3594_v33 = vadd.f32 %v2034_v37, %v2010_v0  ;;  %v2027_v34 = vsel %vm910_vm3, %v2019_v50, %v2013_v27 }
 0x4a1   :  { %v2053_v40 = vadd.f32 %v3582_v36, %v3562_v5  ;;  %v2065_v35 = vmul.f32 %v3582_v36, %v3582_v36  ;;  %v2066_v41 = vmul.f32 %v3586_v39, %v3586_v39  ;;  %v2035_v44 = vsel %vm3389_vm5, %v2027_v34, 0.0 }
 0x4a2   :  { %v2070_v51 = vadd.f32 %v2064_v28, %v2062_v19  ;;  %v2045_v53 = vadd.f32 %v2044_v54, %v3586_v39  ;;  %v3607_v59 = vadd.f32 %v2021_v48, %v2009_v58  ;;  %v2068_v29 = vmul.f32 %v3594_v33, %v3594_v33 }
 0x4a3   :  { %v2079_v49 = vadd.f32 %v2065_v35, %v2063_v26  ;;  %v3611_v52 = vadd.f32 %v2035_v44, %v2011_v17 }
 0x4a4   :  { %v2046_v55 = vadd.f32 %v2045_v53, %v3594_v33  ;;  %v2071_v60 = vadd.f32 %v2070_v51, %v2066_v41  ;;  %v2054_v61 = vadd.f32 %v2053_v40, %v3607_v59  ;;  %v2067_v4 = vmul.f32 %v3607_v59, %v3607_v59  ;;  %v2188_v53 = vld [vmem:[%s3691_s8] sm:$0x1] }
 0x4a5   :  { %v2069_v0 = vmul.f32 %v3611_v52, %v3611_v52 }
 0x4a6   :  { %v2047_v3 = vrot.slane %v2046_v55, 4  ;;  %v2072_v58 = vadd.f32 %v2071_v60, %v2068_v29  ;;  %v2055_v6 = vadd.f32 %v2054_v61, %v3611_v52  ;;  %v2080_v9 = vadd.f32 %v2079_v49, %v2067_v4 }
 0x4a8   :  { %v2048_v56 = vadd.f32 %v2047_v3, %v2046_v55  ;;  %v2073_v13 = vrot.slane %v2072_v58, 4  ;;  %v2056_v17 = vrot.slane %v2055_v6, 4  ;;  %v2081_v18 = vadd.f32 %v2080_v9, %v2069_v0 }
 0x4aa   :  { %v2057_v63 = vadd.f32 %v2056_v17, %v2055_v6  ;;  %v2082_v23 = vrot.slane %v2081_v18, 4  ;;  %v2049_v24 = vrot.slane %v2048_v56, 2  ;;  %v2074_v1 = vadd.f32 %v2073_v13, %v2072_v58 }
 0x4ac   :  { %v2058_v31 = vrot.slane %v2057_v63, 2  ;;  %v2083_v27 = vadd.f32 %v2082_v23, %v2081_v18  ;;  %v2075_v47 = vrot.slane %v2074_v1, 2  ;;  %v2050_v46 = vadd.f32 %v2049_v24, %v2048_v56 }
 0x4ae   :  { %v2059_v62 = vadd.f32 %v2058_v31, %v2057_v63  ;;  %v2084_v8 = vrot.slane %v2083_v27, 2  ;;  %v2076_v10 = vadd.f32 %v2075_v47, %v2074_v1  ;;  %v2051_v19 = vrot.slane %v2050_v46, 1  ;;  %v2986_v47 = vld [vmem:[%s3683_s0 + $0x30] sm:$0xff] }
 0x4b0   :  { %v2060_v11 = vrot.slane %v2059_v62, 1  ;;  %v2085_v14 = vadd.f32 %v2084_v8, %v2083_v27  ;;  %v2077_v16 = vrot.slane %v2076_v10, 1  ;;  %v2052_v30 = vadd.f32 %v2051_v19, %v2050_v46  ;;  %v2990_v19 = vld [vmem:[%s3683_s0 + $0x38] sm:$0xff] }
 0x4b2   :  { %v2086_v38 = vrot.slane %v2085_v14, 1  ;;  %v2078_v20 = vadd.f32 %v2077_v16, %v2076_v10  ;;  %v2061_v15 = vadd.f32 %v2060_v11, %v2059_v62  ;;  %v2987_v62 = vld [vmem:[%s3683_s0 + $0x8] sm:$0xff]  ;;  %v2988_v10 = vld [vmem:[%s3683_s0 + $0x18] sm:$0xff] }
 0x4b4   :  { %v2087_v26 = vadd.f32 %v2086_v38, %v2085_v14  ;;  %v2088_v50 = vsel %vm979_vm6, %v2052_v30, %v2078_v20  ;;  %v2989_v14 = vld [vmem:[%s3683_s0 + $0x28] sm:$0xff] }
 0x4b6   :  { %v2089_v32 = vsel %vm979_vm6, %v2061_v15, %v2087_v26 }
 0x4b7   :  { %2154 = vmatprep.mubr.f32.mxu0 %v2089_v32 }
 0x4b8   :  { %2155 = vmatmul.mubr.f32.vlgmr.msra.gmra.mrb[24].mxu0 %v2088_v50 }
 0x4b9   :  { %2681 = vmatpush1.bf16.msra.mxu0 %v3463_v57  ;;  %2265 = vmatprep.mubr.f32.mxu0 %v3067_v21  ;;  %v2167_v57 = vld [vmem:[%s3690_s7] sm:$0x1] }
 0x58b   :  { %v2607_v22 = vpop.f32.mrb[24].mxu0 }
 0x58c   :  { %v2608_v12 = vpop.f32.mrb[25].mxu0 }
 0x58d   :  { %v2609_v42 = vadd.f32 %v2608_v12, %v2607_v22 }
 0x58f   :  { %v2160_v37 = vmul.f32 0.001953125, %v2609_v42 }
 0x591   :  { %v2161_v48 = vmul.f32 %v2160_v37, %v2160_v37 }
 0x593   :  { %v2163_v54 = vrot.slane %v2161_v48, 7 }
 0x595   :  { %v2165_v28 = vsub.f32 %v2160_v37, %v2163_v54 }
 0x597   :  { %v2166_v34 = vmax.f32 %v2165_v28, 0.0 }
 0x599   :  { %v2168_v40 = vadd.f32 1e-05, %v2166_v34 }
 0x59b   :  { %2981 = vrsqrt.f32 %v2168_v40 }
 0x5a5   :  { %v2982_v35 = vpop.eup %2981 }
 0x5a6   :  { %v2177_v41 = vrot.slane %v2982_v35, %v3469_v7 }
 0x5a8   :  { %v2178_v44 = vcombine.high %v2177_v41, %v2177_v41 }
 0x5aa   :  { %v2185_v21 = vrot.slane %v2178_v44, %v3469_v7 }
 0x5ac   :  { %v2187_v51 = vmul.f32 %v2185_v21, %v2167_v57 }
 0x5ae   :  { %v2189_v49 = vmul.f32 %v2187_v51, %v2160_v37 }
 0x5b0   :  { %v2190_v29 = vsub.f32 %v2188_v53, %v2189_v49 }
 0x5b2   :  { %v2195_v55 = vrot.slane %v2190_v29, %v3480_v45 }
 0x5b4   :  { %v2197_v60 = vsel %vm979_vm6, %v2187_v51, %v2195_v55 }
 0x5b5   :  { %2539 = vmatmul.mubr.msk.f32.vlgmr.msra.gmra.mrb[26].mxu0 %vm1126_vm7, %v2197_v60 }
 0x688   :  { %v2267_v61 = vpop.f32.mrb[26].mxu0 }
 0x689   :  { %v2275_v4 = vrot.slane %v2267_v61, %v3480_v45  ;;  %v2269_v0 = vpop.f32.mrb[27].mxu0  ;;  %v2291_v3 = vrot.slane %v2267_v61, %v3487_v43 }
 0x68a   :  { %v2279_v7 = vrot.slane %v2269_v0, %v3480_v45  ;;  %v2295_v58 = vrot.slane %v2269_v0, %v3487_v43 }
 0x68b   :  { %v2280_v6 = vmul.f32 %v2275_v4, %v3558_v2  ;;  %v2282_v9 = vmul.f32 %v2275_v4, %v3574_v25  ;;  %v2284_v56 = vmul.f32 %v2275_v4, %v3586_v39  ;;  %v2286_v13 = vmul.f32 %v2275_v4, %v3594_v33  ;;  %v2983_v39 = vld [vmem:[%s3683_s0] sm:$0xff] }
 0x68c   :  { %v2281_v17 = vmul.f32 %v2279_v7, %v3562_v5  ;;  %v2283_v18 = vmul.f32 %v2279_v7, %v3582_v36  ;;  %v2285_v63 = vmul.f32 %v2279_v7, %v3607_v59  ;;  %v2287_v23 = vmul.f32 %v2279_v7, %v3611_v52  ;;  %v2984_v5 = vld [vmem:[%s3683_s0 + $0x10] sm:$0xff]  ;;  %v2985_v59 = vld [vmem:[%s3683_s0 + $0x20] sm:$0xff] }
 0x68d   :  { %v2296_v24 = vadd.f32 %v2291_v3, %v2280_v6  ;;  %v2298_v45 = vadd.f32 %v2291_v3, %v2282_v9  ;;  %v2300_v1 = vadd.f32 %v2291_v3, %v2284_v56  ;;  %v2302_v43 = vadd.f32 %v2291_v3, %v2286_v13 }
 0x68e   :  { %v2297_v31 = vadd.f32 %v2295_v58, %v2281_v17  ;;  %v2299_v2 = vadd.f32 %v2295_v58, %v2283_v18  ;;  %v2301_v27 = vadd.f32 %v2295_v58, %v2285_v63  ;;  %v2303_v25 = vadd.f32 %v2295_v58, %v2287_v23 }
 0x68f   :  { %v2304_v33 = vadd.f32 %v2983_v39, %v2296_v24  ;;  %v2306_v36 = vadd.f32 %v2984_v5, %v2298_v45  ;;  %v2308_v52 = vadd.f32 %v2985_v59, %v2300_v1  ;;  %v2310_v46 = vadd.f32 %v2986_v47, %v2302_v43 }
 0x690   :  { %v2305_v8 = vadd.f32 %v2987_v62, %v2297_v31  ;;  %v2307_v11 = vadd.f32 %v2988_v10, %v2299_v2  ;;  %v2309_v16 = vadd.f32 %v2989_v14, %v2301_v27  ;;  %v2311_v38 = vadd.f32 %v2990_v19, %v2303_v25 }
 0x691   :  { %v2312_v20 = vmax.f32 %v2304_v33, 0.0  ;;  %v2314_v15 = vmax.f32 %v2306_v36, 0.0  ;;  %v2316_v26 = vmax.f32 %v2308_v52, 0.0  ;;  %v2318_v30 = vmax.f32 %v2310_v46, 0.0 }
 0x692   :  { %v2313_v32 = vmax.f32 %v2305_v8, 0.0  ;;  %v2315_v50 = vmax.f32 %v2307_v11, 0.0  ;;  %v2317_v22 = vmax.f32 %v2309_v16, 0.0  ;;  %v2319_v12 = vmax.f32 %v2311_v38, 0.0 }
 0x693   :  { %2320 = vst [vmem:[#allocation7] sm:$0xff] %v2312_v20  ;;  %2322 = vst [vmem:[#allocation7 + $0x10] sm:$0xff] %v2314_v15 }
 0x694   :  { %2324 = vst [vmem:[#allocation7 + $0x20] sm:$0xff] %v2316_v26  ;;  %2326 = vst [vmem:[#allocation7 + $0x30] sm:$0xff] %v2318_v30 }
 0x695   :  { %2321 = vst [vmem:[#allocation7 + $0x8] sm:$0xff] %v2313_v32  ;;  %2323 = vst [vmem:[#allocation7 + $0x18] sm:$0xff] %v2315_v50 }
 0x696   :  { %2325 = vst [vmem:[#allocation7 + $0x28] sm:$0xff] %v2317_v22  ;;  %2327 = vst [vmem:[#allocation7 + $0x38] sm:$0xff] %v2319_v12 }
 0x697   :  { %3046 = shalt.err (!%p3043_p6)
}
 0x698   :  { %s3047_s29 = scalar_lea.hbm %s3692_s9, 1024 }
 0x699   :  { %p3048_p7 = scmp.ne.s32.totalorder %s3692_s9, %s3047_s29  ;;  %p3051_p8 = scmp.lt.u32.totalorder %s3047_s29, %s3692_s9 }
 0x69b   :  { %p3053_p9 = pnand %p3051_p8, %p3048_p7 }
 0x69d   :  { %3056 = shalt.err (!%p3053_p9)
}
 0x69e   :  { %s3070_s5 = smov 256   ;;  %s3071_s6 = smov 16  }
 0x69f   :  { %2339 = dma.vmem_to_hbm [thread:$0]  %s2334_s19, 1024, %s3692_s9, [#allocation4], %s3070_s5, %s3070_s5, %s3071_s6  }
 0x6a0   :  { %3061 = dma.done.wait [#allocation4], 1024  }
 0x6a1   :  { %3062 = vsyncadd [#allocation4], 4294966272 }
 0x6a2   :  { %2343 = vsyncpa [#allocation3], 1 }
 0x6a3   :  { %2344 = vsyncpa [#allocation6], 1 }
 0x6a4   :  { %2345 = vsyncpa [#allocation4], 1 }

</bundles_post_ra>
